<compile_context>
chip_gen: v7x
topology: tpu7x:2x2x1
jax: 0.10.0
libtpu: 0.0.40
codegen_flags: <defaults>
</compile_context>

<pallas_src>
import math
from functools import partial

import jax
import jax.numpy as jnp
from jax.experimental import pallas as pl
from jax.experimental.pallas import tpu as pltpu


def _lstm_clf_kernel(x2d_ref,                     # (T*Bp, D)  bf16, time-major flat
                     wih_f_ref, b_f_ref,          # (D, 4H) bf16, (1, 4H) f32  [g cols x2]
                     wih_b_ref, b_b_ref,          # (D, 4H) bf16, (1, 4H) f32  [g cols x2]
                     whh_f_ref,                   # (H, 4H) f32                [g cols x2]
                     w1f_ref, w1b_ref, b1_ref,    # (H, H), (H, H), (1, H) f32
                     w2_ref, b2_ref,              # (H, O), (1, O) f32
                     out_ref,                     # (Bp, O) f32
                     gx_ref):                     # VMEM scratch (T*Bp, 4H) f32
    Bp = out_ref.shape[0]
    H = whh_f_ref.shape[0]
    T = x2d_ref.shape[0] // Bp

    # --- Hoisted forward-direction input projection (once, off the serial
    #     chain), parked in VMEM scratch instead of living in vregs. ---------
    gx_ref[...] = (jnp.dot(x2d_ref[...], wih_f_ref[...],
                           preferred_element_type=jnp.float32)
                   + b_f_ref[...])                          # (T*Bp, 4H) f32

    whh_f = whh_f_ref[...]                                  # (H, 4H) f32

    h = jnp.zeros((Bp, H), jnp.float32)
    c = jnp.zeros((Bp, H), jnp.float32)

    # --- Forward direction: fully unrolled serial recurrence. ---------------
    # PyTorch gate order: i, f, g, o.  The g-gate columns of all weights and
    # biases were pre-scaled by 2, so one sigmoid pass gives every gate:
    #   tanh(x) = 2*sigmoid(2x) - 1.
    for t in range(T):
        gates = (gx_ref[t * Bp:(t + 1) * Bp, :]
                 + jnp.dot(h, whh_f, preferred_element_type=jnp.float32))
        sig = jax.nn.sigmoid(gates)          # single lane-dense (Bp, 128) EUP op
        i = sig[:, 0 * H:1 * H]
        f = sig[:, 1 * H:2 * H]
        g = 2.0 * sig[:, 2 * H:3 * H] - 1.0  # tanh of the un-scaled pre-activation
        o = sig[:, 3 * H:4 * H]
        c = f * c + i * g
        h = o * jnp.tanh(c)
    h_fwd = h

    # --- Backward direction: one step from zero state on x[:, T-1]. ---------
    # h0 = c0 = 0, so the recurrent (h0 @ whh_b) term and the f-gate * c0 term
    # are identically zero and are dropped (whh_b never loaded).  Only the
    # last timestep's rows are projected (no wasted per-t backward gates).
    x_last = x2d_ref[(T - 1) * Bp:T * Bp, :]                 # (Bp, D) bf16
    g_b = (jnp.dot(x_last, wih_b_ref[...],
                   preferred_element_type=jnp.float32)
           + b_b_ref[...])                                   # (Bp, 4H)
    sig_b = jax.nn.sigmoid(g_b)
    c_b = sig_b[:, 0:H] * (2.0 * sig_b[:, 2 * H:3 * H] - 1.0)   # i * tanh-g
    h_bwd = sig_b[:, 3 * H:4 * H] * jnp.tanh(c_b)               # o * tanh(c)

    # --- Decoder MLP: Linear(2H->H) -> ReLU -> Linear(H->O). ----------------
    # concat([h_fwd, h_bwd]) @ w1  ==  h_fwd @ w1[:H] + h_bwd @ w1[H:]
    hid = (jnp.dot(h_fwd, w1f_ref[...], preferred_element_type=jnp.float32)
           + jnp.dot(h_bwd, w1b_ref[...], preferred_element_type=jnp.float32)
           + b1_ref[...])
    hid = jnp.maximum(hid, 0.0)
    out = (jnp.dot(hid, w2_ref[...], preferred_element_type=jnp.float32)
           + b2_ref[...])
    out_ref[...] = out.astype(out_ref.dtype)


def prepare_params(params):
    """One-time packing of the PyTorch-layout params for the kernel.

    Hoisted out of the per-call forward (review): w1 split, g-gate column
    pre-scaling (enables the single-sigmoid gate trick), and bf16 casts of the
    MXU-facing input-projection weights.
    """
    H = params["whh_f"].shape[0]

    def scale_g(w):  # double the g-gate (3rd quarter) columns along the last dim
        return w.at[..., 2 * H:3 * H].multiply(2.0)

    return {
        "wih_f": scale_g(params["wih_f"]).astype(jnp.bfloat16),  # (D, 4H)
        "b_f":   scale_g(params["b_f"]),                         # (1, 4H) f32
        "wih_b": scale_g(params["wih_b"]).astype(jnp.bfloat16),  # (D, 4H)
        "b_b":   scale_g(params["b_b"]),                         # (1, 4H) f32
        "whh_f": scale_g(params["whh_f"]),                       # (H, 4H) f32
        "w1f":   params["w1"][:H],                               # (H, H)
        "w1b":   params["w1"][H:],                               # (H, H)
        "b1":    params["b1"],
        "w2":    params["w2"],
        "b2":    params["b2"],
    }


@jax.jit
def time_series_model_forward(x_btd, packed):
    """x_btd: (B, T, D) float32, batch-first. packed: prepare_params() output.

    Returns (B, num_outputs).
    """
    B, T, D = x_btd.shape
    H = packed["whh_f"].shape[0]
    O = packed["w2"].shape[1]

    # Pad batch to a full f32 sublane group so every vreg row is used.
    # (Larger real batches simply grow Bp — one call, not many.)
    Bp = ((B + 7) // 8) * 8
    x_pad = jnp.pad(x_btd, ((0, Bp - B), (0, 0), (0, 0)))
    # Time-major, flattened: row t*Bp + b  <->  x[b, t, :];  bf16 MXU operand.
    x2d = jnp.transpose(x_pad, (1, 0, 2)).reshape(T * Bp, D).astype(jnp.bfloat16)

    args = (x2d,
            packed["wih_f"], packed["b_f"],
            packed["wih_b"], packed["b_b"],
            packed["whh_f"],
            packed["w1f"], packed["w1b"], packed["b1"],
            packed["w2"], packed["b2"])

    vmem = pl.BlockSpec(memory_space=pltpu.MemorySpace.VMEM)
    out = pl.pallas_call(
        _lstm_clf_kernel,
        out_shape=jax.ShapeDtypeStruct((Bp, O), jnp.float32),
        in_specs=[vmem] * len(args),
        out_specs=vmem,
        scratch_shapes=[pltpu.VMEM((T * Bp, 4 * H), jnp.float32)],
    )(*args)
    return out[:B]


def init_params(key, num_inputs, n_hidden, num_outputs):
    """Deterministic init matching the PyTorch parameter shapes (pre-transposed)."""
    D, H, O = num_inputs, n_hidden, num_outputs
    stdv = 1.0 / math.sqrt(H)
    ks = jax.random.split(key, 13)
    u = lambda k, shape: jax.random.uniform(k, shape, jnp.float32, -stdv, stdv)
    return {
        # LSTM direction 0 (forward): weight_ih_l0^T, weight_hh_l0^T, b_ih+b_hh
        "wih_f": u(ks[0], (D, 4 * H)),
        "whh_f": u(ks[1], (H, 4 * H)),
        "b_f":   u(ks[2], (1, 4 * H)) + u(ks[3], (1, 4 * H)),
        # LSTM direction 1 (reverse) — whh_b kept for the reference model but
        # mathematically dead in this forward (zero initial state, one step).
        "wih_b": u(ks[4], (D, 4 * H)),
        "whh_b": u(ks[5], (H, 4 * H)),
        "b_b":   u(ks[6], (1, 4 * H)) + u(ks[7], (1, 4 * H)),
        # decoder: Linear(2H, H), Linear(H, O)  (stored transposed)
        "w1": u(ks[8], (2 * H, H)),
        "b1": u(ks[9], (1, H)),
        "w2": u(ks[10], (H, O)),
        "b2": u(ks[11], (1, O)),
    }


def reference_forward(x, p):
    """Pure-JAX f32 reference of the same forward pass (correctness check)."""
    B, T, D = x.shape
    H = p["whh_f"].shape[0]

    def step(x_t, h, c, wih, whh, b):
        g = x_t @ wih + h @ whh + b
        i = jax.nn.sigmoid(g[:, :H])
        f = jax.nn.sigmoid(g[:, H:2 * H])
        gg = jnp.tanh(g[:, 2 * H:3 * H])
        o = jax.nn.sigmoid(g[:, 3 * H:])
        c = f * c + i * gg
        return o * jnp.tanh(c), c

    h = jnp.zeros((B, H), jnp.float32)
    c = jnp.zeros((B, H), jnp.float32)
    for t in range(T):
        h, c = step(x[:, t], h, c, p["wih_f"], p["whh_f"], p["b_f"])
    hb, _ = step(x[:, T - 1], jnp.zeros((B, H)), jnp.zeros((B, H)),
                 p["wih_b"], p["whh_b"], p["b_b"])
    enc = jnp.concatenate([h, hb], axis=-1)
    hid = jnp.maximum(enc @ p["w1"] + p["b1"], 0.0)
    return hid @ p["w2"] + p["b2"]


if __name__ == "__main__":
    # Small shapes consistent with the module: num_inputs=4 features,
    # data_len=16 time steps, n_hidden=32, num_outputs=3, batch=2.
    B, T, D, H, O = 2, 16, 4, 32, 3

    key = jax.random.PRNGKey(0)
    k_x, k_p = jax.random.split(key)
    x = jax.random.normal(k_x, (B, T, D), jnp.float32)   # (batch, seq, features)
    params = init_params(k_p, D, H, O)
    packed = prepare_params(params)   # one-time packing, outside the forward

    out = time_series_model_forward(x, packed)
    out = jax.block_until_ready(out)

    ref = reference_forward(x, params)
    assert out.shape == (B, O), out.shape
    # Tolerance relaxed slightly (vs. pure-f32) because the input-projection
    # matmul operands are bf16 per the performance review; all gate / cell /
    # recurrent / decoder math stays f32.
    assert jnp.allclose(out, ref, atol=5e-3, rtol=1e-2), (out, ref)

    print("KERNEL_OK")
</pallas_src>

<mosaic_0001>
module attributes {stable_mosaic.version = 11 : i64} {
  func.func @_lstm_clf_kernel(%arg0: memref<128x4xbf16, #tpu.memory_space<vmem>>, %arg1: memref<4x128xbf16, #tpu.memory_space<vmem>>, %arg2: memref<1x128xf32, #tpu.memory_space<vmem>>, %arg3: memref<4x128xbf16, #tpu.memory_space<vmem>>, %arg4: memref<1x128xf32, #tpu.memory_space<vmem>>, %arg5: memref<32x128xf32, #tpu.memory_space<vmem>>, %arg6: memref<32x32xf32, #tpu.memory_space<vmem>>, %arg7: memref<32x32xf32, #tpu.memory_space<vmem>>, %arg8: memref<1x32xf32, #tpu.memory_space<vmem>>, %arg9: memref<32x3xf32, #tpu.memory_space<vmem>>, %arg10: memref<1x3xf32, #tpu.memory_space<vmem>>, %arg11: memref<8x3xf32, #tpu.memory_space<vmem>>, %arg12: memref<128x128xf32, #tpu.memory_space<vmem>>) attributes {dimension_semantics = [], scalar_prefetch = 0 : i64, scratch_operands = 1 : i64, tpu.core_type = #tpu.core_type<tc>} {
    %c0 = arith.constant 0 : index
    %c0_0 = arith.constant 0 : index
    %0 = vector.load %arg0[%c0, %c0_0] : memref<128x4xbf16, #tpu.memory_space<vmem>>, vector<128x4xbf16>
    %c0_1 = arith.constant 0 : index
    %c0_2 = arith.constant 0 : index
    %1 = vector.load %arg1[%c0_1, %c0_2] : memref<4x128xbf16, #tpu.memory_space<vmem>>, vector<4x128xbf16>
    %cst = arith.constant dense<0.000000e+00> : vector<128x128xf32>
    %2 = tpu.matmul %0, %1, %cst {dimension_numbers = #tpu.dot_dimension_numbers<[1], [0], [0], [1], [0, 0, 1, 1], [], []>} : vector<128x4xbf16>, vector<4x128xbf16>, vector<128x128xf32> -> vector<128x128xf32>
    %c0_3 = arith.constant 0 : index
    %c0_4 = arith.constant 0 : index
    %3 = vector.load %arg2[%c0_3, %c0_4] : memref<1x128xf32, #tpu.memory_space<vmem>>, vector<1x128xf32>
    %4 = vector.broadcast %3 : vector<1x128xf32> to vector<128x128xf32>
    %5 = arith.addf %2, %4 : vector<128x128xf32>
    %c0_5 = arith.constant 0 : index
    %c0_6 = arith.constant 0 : index
    %6 = vector.load %arg12[%c0_5, %c0_6] : memref<128x128xf32, #tpu.memory_space<vmem>>, vector<128x128xf32>
    tpu.vector_store %arg12[%c0_5, %c0_6], %5 {strides = array<i32>} : memref<128x128xf32, #tpu.memory_space<vmem>>, vector<128x128xf32>,
    %c0_7 = arith.constant 0 : index
    %c0_8 = arith.constant 0 : index
    %7 = vector.load %arg5[%c0_7, %c0_8] : memref<32x128xf32, #tpu.memory_space<vmem>>, vector<32x128xf32>
    %cst_9 = arith.constant 0.000000e+00 : f32
    %8 = vector.broadcast %cst_9 : f32 to vector<8x32xf32>
    %cst_10 = arith.constant 0.000000e+00 : f32
    %9 = vector.broadcast %cst_10 : f32 to vector<8x32xf32>
    %c0_11 = arith.constant 0 : index
    %c0_12 = arith.constant 0 : index
    %10 = vector.load %arg12[%c0_11, %c0_12] : memref<128x128xf32, #tpu.memory_space<vmem>>, vector<8x128xf32>
    %cst_13 = arith.constant dense<0.000000e+00> : vector<8x128xf32>
    %11 = tpu.matmul %8, %7, %cst_13 {dimension_numbers = #tpu.dot_dimension_numbers<[1], [0], [0], [1], [0, 0, 1, 1], [], []>} : vector<8x32xf32>, vector<32x128xf32>, vector<8x128xf32> -> vector<8x128xf32>
    %12 = arith.addf %10, %11 : vector<8x128xf32>
    %13 = arith.negf %12 : vector<8x128xf32>
    %14 = math.exp %13 : vector<8x128xf32>
    %cst_14 = arith.constant 1.000000e+00 : f32
    %15 = vector.broadcast %cst_14 : f32 to vector<8x128xf32>
    %16 = arith.addf %15, %14 : vector<8x128xf32>
    %17 = arith.divf %15, %16 : vector<8x128xf32>
    %18 = vector.extract_strided_slice %17 {offsets = [0, 0], sizes = [8, 32], strides = [1, 1]} : vector<8x128xf32> to vector<8x32xf32>
    %19 = vector.extract_strided_slice %17 {offsets = [0, 32], sizes = [8, 32], strides = [1, 1]} : vector<8x128xf32> to vector<8x32xf32>
    %20 = vector.extract_strided_slice %17 {offsets = [0, 64], sizes = [8, 32], strides = [1, 1]} : vector<8x128xf32> to vector<8x32xf32>
    %cst_15 = arith.constant 2.000000e+00 : f32
    %21 = vector.broadcast %cst_15 : f32 to vector<8x32xf32>
    %22 = arith.mulf %21, %20 : vector<8x32xf32>
    %cst_16 = arith.constant 1.000000e+00 : f32
    %23 = vector.broadcast %cst_16 : f32 to vector<8x32xf32>
    %24 = arith.subf %22, %23 : vector<8x32xf32>
    %25 = vector.extract_strided_slice %17 {offsets = [0, 96], sizes = [8, 32], strides = [1, 1]} : vector<8x128xf32> to vector<8x32xf32>
    %26 = arith.mulf %19, %9 : vector<8x32xf32>
    %27 = arith.mulf %18, %24 : vector<8x32xf32>
    %28 = arith.addf %26, %27 : vector<8x32xf32>
    %29 = math.tanh %28 : vector<8x32xf32>
    %30 = arith.mulf %25, %29 : vector<8x32xf32>
    %c8 = arith.constant 8 : index
    %c0_17 = arith.constant 0 : index
    %31 = vector.load %arg12[%c8, %c0_17] : memref<128x128xf32, #tpu.memory_space<vmem>>, vector<8x128xf32>
    %cst_18 = arith.constant dense<0.000000e+00> : vector<8x128xf32>
    %32 = tpu.matmul %30, %7, %cst_18 {dimension_numbers = #tpu.dot_dimension_numbers<[1], [0], [0], [1], [0, 0, 1, 1], [], []>} : vector<8x32xf32>, vector<32x128xf32>, vector<8x128xf32> -> vector<8x128xf32>
    %33 = arith.addf %31, %32 : vector<8x128xf32>
    %34 = arith.negf %33 : vector<8x128xf32>
    %35 = math.exp %34 : vector<8x128xf32>
    %cst_19 = arith.constant 1.000000e+00 : f32
    %36 = vector.broadcast %cst_19 : f32 to vector<8x128xf32>
    %37 = arith.addf %36, %35 : vector<8x128xf32>
    %38 = arith.divf %36, %37 : vector<8x128xf32>
    %39 = vector.extract_strided_slice %38 {offsets = [0, 0], sizes = [8, 32], strides = [1, 1]} : vector<8x128xf32> to vector<8x32xf32>
    %40 = vector.extract_strided_slice %38 {offsets = [0, 32], sizes = [8, 32], strides = [1, 1]} : vector<8x128xf32> to vector<8x32xf32>
    %41 = vector.extract_strided_slice %38 {offsets = [0, 64], sizes = [8, 32], strides = [1, 1]} : vector<8x128xf32> to vector<8x32xf32>
    %cst_20 = arith.constant 2.000000e+00 : f32
    %42 = vector.broadcast %cst_20 : f32 to vector<8x32xf32>
    %43 = arith.mulf %42, %41 : vector<8x32xf32>
    %cst_21 = arith.constant 1.000000e+00 : f32
    %44 = vector.broadcast %cst_21 : f32 to vector<8x32xf32>
    %45 = arith.subf %43, %44 : vector<8x32xf32>
    %46 = vector.extract_strided_slice %38 {offsets = [0, 96], sizes = [8, 32], strides = [1, 1]} : vector<8x128xf32> to vector<8x32xf32>
    %47 = arith.mulf %40, %28 : vector<8x32xf32>
    %48 = arith.mulf %39, %45 : vector<8x32xf32>
    %49 = arith.addf %47, %48 : vector<8x32xf32>
    %50 = math.tanh %49 : vector<8x32xf32>
    %51 = arith.mulf %46, %50 : vector<8x32xf32>
    %c16 = arith.constant 16 : index
    %c0_22 = arith.constant 0 : index
    %52 = vector.load %arg12[%c16, %c0_22] : memref<128x128xf32, #tpu.memory_space<vmem>>, vector<8x128xf32>
    %cst_23 = arith.constant dense<0.000000e+00> : vector<8x128xf32>
    %53 = tpu.matmul %51, %7, %cst_23 {dimension_numbers = #tpu.dot_dimension_numbers<[1], [0], [0], [1], [0, 0, 1, 1], [], []>} : vector<8x32xf32>, vector<32x128xf32>, vector<8x128xf32> -> vector<8x128xf32>
    %54 = arith.addf %52, %53 : vector<8x128xf32>
    %55 = arith.negf %54 : vector<8x128xf32>
    %56 = math.exp %55 : vector<8x128xf32>
    %cst_24 = arith.constant 1.000000e+00 : f32
    %57 = vector.broadcast %cst_24 : f32 to vector<8x128xf32>
    %58 = arith.addf %57, %56 : vector<8x128xf32>
    %59 = arith.divf %57, %58 : vector<8x128xf32>
    %60 = vector.extract_strided_slice %59 {offsets = [0, 0], sizes = [8, 32], strides = [1, 1]} : vector<8x128xf32> to vector<8x32xf32>
    %61 = vector.extract_strided_slice %59 {offsets = [0, 32], sizes = [8, 32], strides = [1, 1]} : vector<8x128xf32> to vector<8x32xf32>
    %62 = vector.extract_strided_slice %59 {offsets = [0, 64], sizes = [8, 32], strides = [1, 1]} : vector<8x128xf32> to vector<8x32xf32>
    %cst_25 = arith.constant 2.000000e+00 : f32
    %63 = vector.broadcast %cst_25 : f32 to vector<8x32xf32>
    %64 = arith.mulf %63, %62 : vector<8x32xf32>
    %cst_26 = arith.constant 1.000000e+00 : f32
    %65 = vector.broadcast %cst_26 : f32 to vector<8x32xf32>
    %66 = arith.subf %64, %65 : vector<8x32xf32>
    %67 = vector.extract_strided_slice %59 {offsets = [0, 96], sizes = [8, 32], strides = [1, 1]} : vector<8x128xf32> to vector<8x32xf32>
    %68 = arith.mulf %61, %49 : vector<8x32xf32>
    %69 = arith.mulf %60, %66 : vector<8x32xf32>
    %70 = arith.addf %68, %69 : vector<8x32xf32>
    %71 = math.tanh %70 : vector<8x32xf32>
    %72 = arith.mulf %67, %71 : vector<8x32xf32>
    %c24 = arith.constant 24 : index
    %c0_27 = arith.constant 0 : index
    %73 = vector.load %arg12[%c24, %c0_27] : memref<128x128xf32, #tpu.memory_space<vmem>>, vector<8x128xf32>
    %cst_28 = arith.constant dense<0.000000e+00> : vector<8x128xf32>
    %74 = tpu.matmul %72, %7, %cst_28 {dimension_numbers = #tpu.dot_dimension_numbers<[1], [0], [0], [1], [0, 0, 1, 1], [], []>} : vector<8x32xf32>, vector<32x128xf32>, vector<8x128xf32> -> vector<8x128xf32>
    %75 = arith.addf %73, %74 : vector<8x128xf32>
    %76 = arith.negf %75 : vector<8x128xf32>
    %77 = math.exp %76 : vector<8x128xf32>
    %cst_29 = arith.constant 1.000000e+00 : f32
    %78 = vector.broadcast %cst_29 : f32 to vector<8x128xf32>
    %79 = arith.addf %78, %77 : vector<8x128xf32>
    %80 = arith.divf %78, %79 : vector<8x128xf32>
    %81 = vector.extract_strided_slice %80 {offsets = [0, 0], sizes = [8, 32], strides = [1, 1]} : vector<8x128xf32> to vector<8x32xf32>
    %82 = vector.extract_strided_slice %80 {offsets = [0, 32], sizes = [8, 32], strides = [1, 1]} : vector<8x128xf32> to vector<8x32xf32>
    %83 = vector.extract_strided_slice %80 {offsets = [0, 64], sizes = [8, 32], strides = [1, 1]} : vector<8x128xf32> to vector<8x32xf32>
    %cst_30 = arith.constant 2.000000e+00 : f32
    %84 = vector.broadcast %cst_30 : f32 to vector<8x32xf32>
    %85 = arith.mulf %84, %83 : vector<8x32xf32>
    %cst_31 = arith.constant 1.000000e+00 : f32
    %86 = vector.broadcast %cst_31 : f32 to vector<8x32xf32>
    %87 = arith.subf %85, %86 : vector<8x32xf32>
    %88 = vector.extract_strided_slice %80 {offsets = [0, 96], sizes = [8, 32], strides = [1, 1]} : vector<8x128xf32> to vector<8x32xf32>
    %89 = arith.mulf %82, %70 : vector<8x32xf32>
    %90 = arith.mulf %81, %87 : vector<8x32xf32>
    %91 = arith.addf %89, %90 : vector<8x32xf32>
    %92 = math.tanh %91 : vector<8x32xf32>
    %93 = arith.mulf %88, %92 : vector<8x32xf32>
    %c32 = arith.constant 32 : index
    %c0_32 = arith.constant 0 : index
    %94 = vector.load %arg12[%c32, %c0_32] : memref<128x128xf32, #tpu.memory_space<vmem>>, vector<8x128xf32>
    %cst_33 = arith.constant dense<0.000000e+00> : vector<8x128xf32>
    %95 = tpu.matmul %93, %7, %cst_33 {dimension_numbers = #tpu.dot_dimension_numbers<[1], [0], [0], [1], [0, 0, 1, 1], [], []>} : vector<8x32xf32>, vector<32x128xf32>, vector<8x128xf32> -> vector<8x128xf32>
    %96 = arith.addf %94, %95 : vector<8x128xf32>
    %97 = arith.negf %96 : vector<8x128xf32>
    %98 = math.exp %97 : vector<8x128xf32>
    %cst_34 = arith.constant 1.000000e+00 : f32
    %99 = vector.broadcast %cst_34 : f32 to vector<8x128xf32>
    %100 = arith.addf %99, %98 : vector<8x128xf32>
    %101 = arith.divf %99, %100 : vector<8x128xf32>
    %102 = vector.extract_strided_slice %101 {offsets = [0, 0], sizes = [8, 32], strides = [1, 1]} : vector<8x128xf32> to vector<8x32xf32>
    %103 = vector.extract_strided_slice %101 {offsets = [0, 32], sizes = [8, 32], strides = [1, 1]} : vector<8x128xf32> to vector<8x32xf32>
    %104 = vector.extract_strided_slice %101 {offsets = [0, 64], sizes = [8, 32], strides = [1, 1]} : vector<8x128xf32> to vector<8x32xf32>
    %cst_35 = arith.constant 2.000000e+00 : f32
    %105 = vector.broadcast %cst_35 : f32 to vector<8x32xf32>
    %106 = arith.mulf %105, %104 : vector<8x32xf32>
    %cst_36 = arith.constant 1.000000e+00 : f32
    %107 = vector.broadcast %cst_36 : f32 to vector<8x32xf32>
    %108 = arith.subf %106, %107 : vector<8x32xf32>
    %109 = vector.extract_strided_slice %101 {offsets = [0, 96], sizes = [8, 32], strides = [1, 1]} : vector<8x128xf32> to vector<8x32xf32>
    %110 = arith.mulf %103, %91 : vector<8x32xf32>
    %111 = arith.mulf %102, %108 : vector<8x32xf32>
    %112 = arith.addf %110, %111 : vector<8x32xf32>
    %113 = math.tanh %112 : vector<8x32xf32>
    %114 = arith.mulf %109, %113 : vector<8x32xf32>
    %c40 = arith.constant 40 : index
    %c0_37 = arith.constant 0 : index
    %115 = vector.load %arg12[%c40, %c0_37] : memref<128x128xf32, #tpu.memory_space<vmem>>, vector<8x128xf32>
    %cst_38 = arith.constant dense<0.000000e+00> : vector<8x128xf32>
    %116 = tpu.matmul %114, %7, %cst_38 {dimension_numbers = #tpu.dot_dimension_numbers<[1], [0], [0], [1], [0, 0, 1, 1], [], []>} : vector<8x32xf32>, vector<32x128xf32>, vector<8x128xf32> -> vector<8x128xf32>
    %117 = arith.addf %115, %116 : vector<8x128xf32>
    %118 = arith.negf %117 : vector<8x128xf32>
    %119 = math.exp %118 : vector<8x128xf32>
    %cst_39 = arith.constant 1.000000e+00 : f32
    %120 = vector.broadcast %cst_39 : f32 to vector<8x128xf32>
    %121 = arith.addf %120, %119 : vector<8x128xf32>
    %122 = arith.divf %120, %121 : vector<8x128xf32>
    %123 = vector.extract_strided_slice %122 {offsets = [0, 0], sizes = [8, 32], strides = [1, 1]} : vector<8x128xf32> to vector<8x32xf32>
    %124 = vector.extract_strided_slice %122 {offsets = [0, 32], sizes = [8, 32], strides = [1, 1]} : vector<8x128xf32> to vector<8x32xf32>
    %125 = vector.extract_strided_slice %122 {offsets = [0, 64], sizes = [8, 32], strides = [1, 1]} : vector<8x128xf32> to vector<8x32xf32>
    %cst_40 = arith.constant 2.000000e+00 : f32
    %126 = vector.broadcast %cst_40 : f32 to vector<8x32xf32>
    %127 = arith.mulf %126, %125 : vector<8x32xf32>
    %cst_41 = arith.constant 1.000000e+00 : f32
    %128 = vector.broadcast %cst_41 : f32 to vector<8x32xf32>
    %129 = arith.subf %127, %128 : vector<8x32xf32>
    %130 = vector.extract_strided_slice %122 {offsets = [0, 96], sizes = [8, 32], strides = [1, 1]} : vector<8x128xf32> to vector<8x32xf32>
    %131 = arith.mulf %124, %112 : vector<8x32xf32>
    %132 = arith.mulf %123, %129 : vector<8x32xf32>
    %133 = arith.addf %131, %132 : vector<8x32xf32>
    %134 = math.tanh %133 : vector<8x32xf32>
    %135 = arith.mulf %130, %134 : vector<8x32xf32>
    %c48 = arith.constant 48 : index
    %c0_42 = arith.constant 0 : index
    %136 = vector.load %arg12[%c48, %c0_42] : memref<128x128xf32, #tpu.memory_space<vmem>>, vector<8x128xf32>
    %cst_43 = arith.constant dense<0.000000e+00> : vector<8x128xf32>
    %137 = tpu.matmul %135, %7, %cst_43 {dimension_numbers = #tpu.dot_dimension_numbers<[1], [0], [0], [1], [0, 0, 1, 1], [], []>} : vector<8x32xf32>, vector<32x128xf32>, vector<8x128xf32> -> vector<8x128xf32>
    %138 = arith.addf %136, %137 : vector<8x128xf32>
    %139 = arith.negf %138 : vector<8x128xf32>
    %140 = math.exp %139 : vector<8x128xf32>
    %cst_44 = arith.constant 1.000000e+00 : f32
    %141 = vector.broadcast %cst_44 : f32 to vector<8x128xf32>
    %142 = arith.addf %141, %140 : vector<8x128xf32>
    %143 = arith.divf %141, %142 : vector<8x128xf32>
    %144 = vector.extract_strided_slice %143 {offsets = [0, 0], sizes = [8, 32], strides = [1, 1]} : vector<8x128xf32> to vector<8x32xf32>
    %145 = vector.extract_strided_slice %143 {offsets = [0, 32], sizes = [8, 32], strides = [1, 1]} : vector<8x128xf32> to vector<8x32xf32>
    %146 = vector.extract_strided_slice %143 {offsets = [0, 64], sizes = [8, 32], strides = [1, 1]} : vector<8x128xf32> to vector<8x32xf32>
    %cst_45 = arith.constant 2.000000e+00 : f32
    %147 = vector.broadcast %cst_45 : f32 to vector<8x32xf32>
    %148 = arith.mulf %147, %146 : vector<8x32xf32>
    %cst_46 = arith.constant 1.000000e+00 : f32
    %149 = vector.broadcast %cst_46 : f32 to vector<8x32xf32>
    %150 = arith.subf %148, %149 : vector<8x32xf32>
    %151 = vector.extract_strided_slice %143 {offsets = [0, 96], sizes = [8, 32], strides = [1, 1]} : vector<8x128xf32> to vector<8x32xf32>
    %152 = arith.mulf %145, %133 : vector<8x32xf32>
    %153 = arith.mulf %144, %150 : vector<8x32xf32>
    %154 = arith.addf %152, %153 : vector<8x32xf32>
    %155 = math.tanh %154 : vector<8x32xf32>
    %156 = arith.mulf %151, %155 : vector<8x32xf32>
    %c56 = arith.constant 56 : index
    %c0_47 = arith.constant 0 : index
    %157 = vector.load %arg12[%c56, %c0_47] : memref<128x128xf32, #tpu.memory_space<vmem>>, vector<8x128xf32>
    %cst_48 = arith.constant dense<0.000000e+00> : vector<8x128xf32>
    %158 = tpu.matmul %156, %7, %cst_48 {dimension_numbers = #tpu.dot_dimension_numbers<[1], [0], [0], [1], [0, 0, 1, 1], [], []>} : vector<8x32xf32>, vector<32x128xf32>, vector<8x128xf32> -> vector<8x128xf32>
    %159 = arith.addf %157, %158 : vector<8x128xf32>
    %160 = arith.negf %159 : vector<8x128xf32>
    %161 = math.exp %160 : vector<8x128xf32>
    %cst_49 = arith.constant 1.000000e+00 : f32
    %162 = vector.broadcast %cst_49 : f32 to vector<8x128xf32>
    %163 = arith.addf %162, %161 : vector<8x128xf32>
    %164 = arith.divf %162, %163 : vector<8x128xf32>
    %165 = vector.extract_strided_slice %164 {offsets = [0, 0], sizes = [8, 32], strides = [1, 1]} : vector<8x128xf32> to vector<8x32xf32>
    %166 = vector.extract_strided_slice %164 {offsets = [0, 32], sizes = [8, 32], strides = [1, 1]} : vector<8x128xf32> to vector<8x32xf32>
    %167 = vector.extract_strided_slice %164 {offsets = [0, 64], sizes = [8, 32], strides = [1, 1]} : vector<8x128xf32> to vector<8x32xf32>
    %cst_50 = arith.constant 2.000000e+00 : f32
    %168 = vector.broadcast %cst_50 : f32 to vector<8x32xf32>
    %169 = arith.mulf %168, %167 : vector<8x32xf32>
    %cst_51 = arith.constant 1.000000e+00 : f32
    %170 = vector.broadcast %cst_51 : f32 to vector<8x32xf32>
    %171 = arith.subf %169, %170 : vector<8x32xf32>
    %172 = vector.extract_strided_slice %164 {offsets = [0, 96], sizes = [8, 32], strides = [1, 1]} : vector<8x128xf32> to vector<8x32xf32>
    %173 = arith.mulf %166, %154 : vector<8x32xf32>
    %174 = arith.mulf %165, %171 : vector<8x32xf32>
    %175 = arith.addf %173, %174 : vector<8x32xf32>
    %176 = math.tanh %175 : vector<8x32xf32>
    %177 = arith.mulf %172, %176 : vector<8x32xf32>
    %c64 = arith.constant 64 : index
    %c0_52 = arith.constant 0 : index
    %178 = vector.load %arg12[%c64, %c0_52] : memref<128x128xf32, #tpu.memory_space<vmem>>, vector<8x128xf32>
    %cst_53 = arith.constant dense<0.000000e+00> : vector<8x128xf32>
    %179 = tpu.matmul %177, %7, %cst_53 {dimension_numbers = #tpu.dot_dimension_numbers<[1], [0], [0], [1], [0, 0, 1, 1], [], []>} : vector<8x32xf32>, vector<32x128xf32>, vector<8x128xf32> -> vector<8x128xf32>
    %180 = arith.addf %178, %179 : vector<8x128xf32>
    %181 = arith.negf %180 : vector<8x128xf32>
    %182 = math.exp %181 : vector<8x128xf32>
    %cst_54 = arith.constant 1.000000e+00 : f32
    %183 = vector.broadcast %cst_54 : f32 to vector<8x128xf32>
    %184 = arith.addf %183, %182 : vector<8x128xf32>
    %185 = arith.divf %183, %184 : vector<8x128xf32>
    %186 = vector.extract_strided_slice %185 {offsets = [0, 0], sizes = [8, 32], strides = [1, 1]} : vector<8x128xf32> to vector<8x32xf32>
    %187 = vector.extract_strided_slice %185 {offsets = [0, 32], sizes = [8, 32], strides = [1, 1]} : vector<8x128xf32> to vector<8x32xf32>
    %188 = vector.extract_strided_slice %185 {offsets = [0, 64], sizes = [8, 32], strides = [1, 1]} : vector<8x128xf32> to vector<8x32xf32>
    %cst_55 = arith.constant 2.000000e+00 : f32
    %189 = vector.broadcast %cst_55 : f32 to vector<8x32xf32>
    %190 = arith.mulf %189, %188 : vector<8x32xf32>
    %cst_56 = arith.constant 1.000000e+00 : f32
    %191 = vector.broadcast %cst_56 : f32 to vector<8x32xf32>
    %192 = arith.subf %190, %191 : vector<8x32xf32>
    %193 = vector.extract_strided_slice %185 {offsets = [0, 96], sizes = [8, 32], strides = [1, 1]} : vector<8x128xf32> to vector<8x32xf32>
    %194 = arith.mulf %187, %175 : vector<8x32xf32>
    %195 = arith.mulf %186, %192 : vector<8x32xf32>
    %196 = arith.addf %194, %195 : vector<8x32xf32>
    %197 = math.tanh %196 : vector<8x32xf32>
    %198 = arith.mulf %193, %197 : vector<8x32xf32>
    %c72 = arith.constant 72 : index
    %c0_57 = arith.constant 0 : index
    %199 = vector.load %arg12[%c72, %c0_57] : memref<128x128xf32, #tpu.memory_space<vmem>>, vector<8x128xf32>
    %cst_58 = arith.constant dense<0.000000e+00> : vector<8x128xf32>
    %200 = tpu.matmul %198, %7, %cst_58 {dimension_numbers = #tpu.dot_dimension_numbers<[1], [0], [0], [1], [0, 0, 1, 1], [], []>} : vector<8x32xf32>, vector<32x128xf32>, vector<8x128xf32> -> vector<8x128xf32>
    %201 = arith.addf %199, %200 : vector<8x128xf32>
    %202 = arith.negf %201 : vector<8x128xf32>
    %203 = math.exp %202 : vector<8x128xf32>
    %cst_59 = arith.constant 1.000000e+00 : f32
    %204 = vector.broadcast %cst_59 : f32 to vector<8x128xf32>
    %205 = arith.addf %204, %203 : vector<8x128xf32>
    %206 = arith.divf %204, %205 : vector<8x128xf32>
    %207 = vector.extract_strided_slice %206 {offsets = [0, 0], sizes = [8, 32], strides = [1, 1]} : vector<8x128xf32> to vector<8x32xf32>
    %208 = vector.extract_strided_slice %206 {offsets = [0, 32], sizes = [8, 32], strides = [1, 1]} : vector<8x128xf32> to vector<8x32xf32>
    %209 = vector.extract_strided_slice %206 {offsets = [0, 64], sizes = [8, 32], strides = [1, 1]} : vector<8x128xf32> to vector<8x32xf32>
    %cst_60 = arith.constant 2.000000e+00 : f32
    %210 = vector.broadcast %cst_60 : f32 to vector<8x32xf32>
    %211 = arith.mulf %210, %209 : vector<8x32xf32>
    %cst_61 = arith.constant 1.000000e+00 : f32
    %212 = vector.broadcast %cst_61 : f32 to vector<8x32xf32>
    %213 = arith.subf %211, %212 : vector<8x32xf32>
    %214 = vector.extract_strided_slice %206 {offsets = [0, 96], sizes = [8, 32], strides = [1, 1]} : vector<8x128xf32> to vector<8x32xf32>
    %215 = arith.mulf %208, %196 : vector<8x32xf32>
    %216 = arith.mulf %207, %213 : vector<8x32xf32>
    %217 = arith.addf %215, %216 : vector<8x32xf32>
    %218 = math.tanh %217 : vector<8x32xf32>
    %219 = arith.mulf %214, %218 : vector<8x32xf32>
    %c80 = arith.constant 80 : index
    %c0_62 = arith.constant 0 : index
    %220 = vector.load %arg12[%c80, %c0_62] : memref<128x128xf32, #tpu.memory_space<vmem>>, vector<8x128xf32>
    %cst_63 = arith.constant dense<0.000000e+00> : vector<8x128xf32>
    %221 = tpu.matmul %219, %7, %cst_63 {dimension_numbers = #tpu.dot_dimension_numbers<[1], [0], [0], [1], [0, 0, 1, 1], [], []>} : vector<8x32xf32>, vector<32x128xf32>, vector<8x128xf32> -> vector<8x128xf32>
    %222 = arith.addf %220, %221 : vector<8x128xf32>
    %223 = arith.negf %222 : vector<8x128xf32>
    %224 = math.exp %223 : vector<8x128xf32>
    %cst_64 = arith.constant 1.000000e+00 : f32
    %225 = vector.broadcast %cst_64 : f32 to vector<8x128xf32>
    %226 = arith.addf %225, %224 : vector<8x128xf32>
    %227 = arith.divf %225, %226 : vector<8x128xf32>
    %228 = vector.extract_strided_slice %227 {offsets = [0, 0], sizes = [8, 32], strides = [1, 1]} : vector<8x128xf32> to vector<8x32xf32>
    %229 = vector.extract_strided_slice %227 {offsets = [0, 32], sizes = [8, 32], strides = [1, 1]} : vector<8x128xf32> to vector<8x32xf32>
    %230 = vector.extract_strided_slice %227 {offsets = [0, 64], sizes = [8, 32], strides = [1, 1]} : vector<8x128xf32> to vector<8x32xf32>
    %cst_65 = arith.constant 2.000000e+00 : f32
    %231 = vector.broadcast %cst_65 : f32 to vector<8x32xf32>
    %232 = arith.mulf %231, %230 : vector<8x32xf32>
    %cst_66 = arith.constant 1.000000e+00 : f32
    %233 = vector.broadcast %cst_66 : f32 to vector<8x32xf32>
    %234 = arith.subf %232, %233 : vector<8x32xf32>
    %235 = vector.extract_strided_slice %227 {offsets = [0, 96], sizes = [8, 32], strides = [1, 1]} : vector<8x128xf32> to vector<8x32xf32>
    %236 = arith.mulf %229, %217 : vector<8x32xf32>
    %237 = arith.mulf %228, %234 : vector<8x32xf32>
    %238 = arith.addf %236, %237 : vector<8x32xf32>
    %239 = math.tanh %238 : vector<8x32xf32>
    %240 = arith.mulf %235, %239 : vector<8x32xf32>
    %c88 = arith.constant 88 : index
    %c0_67 = arith.constant 0 : index
    %241 = vector.load %arg12[%c88, %c0_67] : memref<128x128xf32, #tpu.memory_space<vmem>>, vector<8x128xf32>
    %cst_68 = arith.constant dense<0.000000e+00> : vector<8x128xf32>
    %242 = tpu.matmul %240, %7, %cst_68 {dimension_numbers = #tpu.dot_dimension_numbers<[1], [0], [0], [1], [0, 0, 1, 1], [], []>} : vector<8x32xf32>, vector<32x128xf32>, vector<8x128xf32> -> vector<8x128xf32>
    %243 = arith.addf %241, %242 : vector<8x128xf32>
    %244 = arith.negf %243 : vector<8x128xf32>
    %245 = math.exp %244 : vector<8x128xf32>
    %cst_69 = arith.constant 1.000000e+00 : f32
    %246 = vector.broadcast %cst_69 : f32 to vector<8x128xf32>
    %247 = arith.addf %246, %245 : vector<8x128xf32>
    %248 = arith.divf %246, %247 : vector<8x128xf32>
    %249 = vector.extract_strided_slice %248 {offsets = [0, 0], sizes = [8, 32], strides = [1, 1]} : vector<8x128xf32> to vector<8x32xf32>
    %250 = vector.extract_strided_slice %248 {offsets = [0, 32], sizes = [8, 32], strides = [1, 1]} : vector<8x128xf32> to vector<8x32xf32>
    %251 = vector.extract_strided_slice %248 {offsets = [0, 64], sizes = [8, 32], strides = [1, 1]} : vector<8x128xf32> to vector<8x32xf32>
    %cst_70 = arith.constant 2.000000e+00 : f32
    %252 = vector.broadcast %cst_70 : f32 to vector<8x32xf32>
    %253 = arith.mulf %252, %251 : vector<8x32xf32>
    %cst_71 = arith.constant 1.000000e+00 : f32
    %254 = vector.broadcast %cst_71 : f32 to vector<8x32xf32>
    %255 = arith.subf %253, %254 : vector<8x32xf32>
    %256 = vector.extract_strided_slice %248 {offsets = [0, 96], sizes = [8, 32], strides = [1, 1]} : vector<8x128xf32> to vector<8x32xf32>
    %257 = arith.mulf %250, %238 : vector<8x32xf32>
    %258 = arith.mulf %249, %255 : vector<8x32xf32>
    %259 = arith.addf %257, %258 : vector<8x32xf32>
    %260 = math.tanh %259 : vector<8x32xf32>
    %261 = arith.mulf %256, %260 : vector<8x32xf32>
    %c96 = arith.constant 96 : index
    %c0_72 = arith.constant 0 : index
    %262 = vector.load %arg12[%c96, %c0_72] : memref<128x128xf32, #tpu.memory_space<vmem>>, vector<8x128xf32>
    %cst_73 = arith.constant dense<0.000000e+00> : vector<8x128xf32>
    %263 = tpu.matmul %261, %7, %cst_73 {dimension_numbers = #tpu.dot_dimension_numbers<[1], [0], [0], [1], [0, 0, 1, 1], [], []>} : vector<8x32xf32>, vector<32x128xf32>, vector<8x128xf32> -> vector<8x128xf32>
    %264 = arith.addf %262, %263 : vector<8x128xf32>
    %265 = arith.negf %264 : vector<8x128xf32>
    %266 = math.exp %265 : vector<8x128xf32>
    %cst_74 = arith.constant 1.000000e+00 : f32
    %267 = vector.broadcast %cst_74 : f32 to vector<8x128xf32>
    %268 = arith.addf %267, %266 : vector<8x128xf32>
    %269 = arith.divf %267, %268 : vector<8x128xf32>
    %270 = vector.extract_strided_slice %269 {offsets = [0, 0], sizes = [8, 32], strides = [1, 1]} : vector<8x128xf32> to vector<8x32xf32>
    %271 = vector.extract_strided_slice %269 {offsets = [0, 32], sizes = [8, 32], strides = [1, 1]} : vector<8x128xf32> to vector<8x32xf32>
    %272 = vector.extract_strided_slice %269 {offsets = [0, 64], sizes = [8, 32], strides = [1, 1]} : vector<8x128xf32> to vector<8x32xf32>
    %cst_75 = arith.constant 2.000000e+00 : f32
    %273 = vector.broadcast %cst_75 : f32 to vector<8x32xf32>
    %274 = arith.mulf %273, %272 : vector<8x32xf32>
    %cst_76 = arith.constant 1.000000e+00 : f32
    %275 = vector.broadcast %cst_76 : f32 to vector<8x32xf32>
    %276 = arith.subf %274, %275 : vector<8x32xf32>
    %277 = vector.extract_strided_slice %269 {offsets = [0, 96], sizes = [8, 32], strides = [1, 1]} : vector<8x128xf32> to vector<8x32xf32>
    %278 = arith.mulf %271, %259 : vector<8x32xf32>
    %279 = arith.mulf %270, %276 : vector<8x32xf32>
    %280 = arith.addf %278, %279 : vector<8x32xf32>
    %281 = math.tanh %280 : vector<8x32xf32>
    %282 = arith.mulf %277, %281 : vector<8x32xf32>
    %c104 = arith.constant 104 : index
    %c0_77 = arith.constant 0 : index
    %283 = vector.load %arg12[%c104, %c0_77] : memref<128x128xf32, #tpu.memory_space<vmem>>, vector<8x128xf32>
    %cst_78 = arith.constant dense<0.000000e+00> : vector<8x128xf32>
    %284 = tpu.matmul %282, %7, %cst_78 {dimension_numbers = #tpu.dot_dimension_numbers<[1], [0], [0], [1], [0, 0, 1, 1], [], []>} : vector<8x32xf32>, vector<32x128xf32>, vector<8x128xf32> -> vector<8x128xf32>
    %285 = arith.addf %283, %284 : vector<8x128xf32>
    %286 = arith.negf %285 : vector<8x128xf32>
    %287 = math.exp %286 : vector<8x128xf32>
    %cst_79 = arith.constant 1.000000e+00 : f32
    %288 = vector.broadcast %cst_79 : f32 to vector<8x128xf32>
    %289 = arith.addf %288, %287 : vector<8x128xf32>
    %290 = arith.divf %288, %289 : vector<8x128xf32>
    %291 = vector.extract_strided_slice %290 {offsets = [0, 0], sizes = [8, 32], strides = [1, 1]} : vector<8x128xf32> to vector<8x32xf32>
    %292 = vector.extract_strided_slice %290 {offsets = [0, 32], sizes = [8, 32], strides = [1, 1]} : vector<8x128xf32> to vector<8x32xf32>
    %293 = vector.extract_strided_slice %290 {offsets = [0, 64], sizes = [8, 32], strides = [1, 1]} : vector<8x128xf32> to vector<8x32xf32>
    %cst_80 = arith.constant 2.000000e+00 : f32
    %294 = vector.broadcast %cst_80 : f32 to vector<8x32xf32>
    %295 = arith.mulf %294, %293 : vector<8x32xf32>
    %cst_81 = arith.constant 1.000000e+00 : f32
    %296 = vector.broadcast %cst_81 : f32 to vector<8x32xf32>
    %297 = arith.subf %295, %296 : vector<8x32xf32>
    %298 = vector.extract_strided_slice %290 {offsets = [0, 96], sizes = [8, 32], strides = [1, 1]} : vector<8x128xf32> to vector<8x32xf32>
    %299 = arith.mulf %292, %280 : vector<8x32xf32>
    %300 = arith.mulf %291, %297 : vector<8x32xf32>
    %301 = arith.addf %299, %300 : vector<8x32xf32>
    %302 = math.tanh %301 : vector<8x32xf32>
    %303 = arith.mulf %298, %302 : vector<8x32xf32>
    %c112 = arith.constant 112 : index
    %c0_82 = arith.constant 0 : index
    %304 = vector.load %arg12[%c112, %c0_82] : memref<128x128xf32, #tpu.memory_space<vmem>>, vector<8x128xf32>
    %cst_83 = arith.constant dense<0.000000e+00> : vector<8x128xf32>
    %305 = tpu.matmul %303, %7, %cst_83 {dimension_numbers = #tpu.dot_dimension_numbers<[1], [0], [0], [1], [0, 0, 1, 1], [], []>} : vector<8x32xf32>, vector<32x128xf32>, vector<8x128xf32> -> vector<8x128xf32>
    %306 = arith.addf %304, %305 : vector<8x128xf32>
    %307 = arith.negf %306 : vector<8x128xf32>
    %308 = math.exp %307 : vector<8x128xf32>
    %cst_84 = arith.constant 1.000000e+00 : f32
    %309 = vector.broadcast %cst_84 : f32 to vector<8x128xf32>
    %310 = arith.addf %309, %308 : vector<8x128xf32>
    %311 = arith.divf %309, %310 : vector<8x128xf32>
    %312 = vector.extract_strided_slice %311 {offsets = [0, 0], sizes = [8, 32], strides = [1, 1]} : vector<8x128xf32> to vector<8x32xf32>
    %313 = vector.extract_strided_slice %311 {offsets = [0, 32], sizes = [8, 32], strides = [1, 1]} : vector<8x128xf32> to vector<8x32xf32>
    %314 = vector.extract_strided_slice %311 {offsets = [0, 64], sizes = [8, 32], strides = [1, 1]} : vector<8x128xf32> to vector<8x32xf32>
    %cst_85 = arith.constant 2.000000e+00 : f32
    %315 = vector.broadcast %cst_85 : f32 to vector<8x32xf32>
    %316 = arith.mulf %315, %314 : vector<8x32xf32>
    %cst_86 = arith.constant 1.000000e+00 : f32
    %317 = vector.broadcast %cst_86 : f32 to vector<8x32xf32>
    %318 = arith.subf %316, %317 : vector<8x32xf32>
    %319 = vector.extract_strided_slice %311 {offsets = [0, 96], sizes = [8, 32], strides = [1, 1]} : vector<8x128xf32> to vector<8x32xf32>
    %320 = arith.mulf %313, %301 : vector<8x32xf32>
    %321 = arith.mulf %312, %318 : vector<8x32xf32>
    %322 = arith.addf %320, %321 : vector<8x32xf32>
    %323 = math.tanh %322 : vector<8x32xf32>
    %324 = arith.mulf %319, %323 : vector<8x32xf32>
    %c120 = arith.constant 120 : index
    %c0_87 = arith.constant 0 : index
    %325 = vector.load %arg12[%c120, %c0_87] : memref<128x128xf32, #tpu.memory_space<vmem>>, vector<8x128xf32>
    %cst_88 = arith.constant dense<0.000000e+00> : vector<8x128xf32>
    %326 = tpu.matmul %324, %7, %cst_88 {dimension_numbers = #tpu.dot_dimension_numbers<[1], [0], [0], [1], [0, 0, 1, 1], [], []>} : vector<8x32xf32>, vector<32x128xf32>, vector<8x128xf32> -> vector<8x128xf32>
    %327 = arith.addf %325, %326 : vector<8x128xf32>
    %328 = arith.negf %327 : vector<8x128xf32>
    %329 = math.exp %328 : vector<8x128xf32>
    %cst_89 = arith.constant 1.000000e+00 : f32
    %330 = vector.broadcast %cst_89 : f32 to vector<8x128xf32>
    %331 = arith.addf %330, %329 : vector<8x128xf32>
    %332 = arith.divf %330, %331 : vector<8x128xf32>
    %333 = vector.extract_strided_slice %332 {offsets = [0, 0], sizes = [8, 32], strides = [1, 1]} : vector<8x128xf32> to vector<8x32xf32>
    %334 = vector.extract_strided_slice %332 {offsets = [0, 32], sizes = [8, 32], strides = [1, 1]} : vector<8x128xf32> to vector<8x32xf32>
    %335 = vector.extract_strided_slice %332 {offsets = [0, 64], sizes = [8, 32], strides = [1, 1]} : vector<8x128xf32> to vector<8x32xf32>
    %cst_90 = arith.constant 2.000000e+00 : f32
    %336 = vector.broadcast %cst_90 : f32 to vector<8x32xf32>
    %337 = arith.mulf %336, %335 : vector<8x32xf32>
    %cst_91 = arith.constant 1.000000e+00 : f32
    %338 = vector.broadcast %cst_91 : f32 to vector<8x32xf32>
    %339 = arith.subf %337, %338 : vector<8x32xf32>
    %340 = vector.extract_strided_slice %332 {offsets = [0, 96], sizes = [8, 32], strides = [1, 1]} : vector<8x128xf32> to vector<8x32xf32>
    %341 = arith.mulf %334, %322 : vector<8x32xf32>
    %342 = arith.mulf %333, %339 : vector<8x32xf32>
    %343 = arith.addf %341, %342 : vector<8x32xf32>
    %344 = math.tanh %343 : vector<8x32xf32>
    %345 = arith.mulf %340, %344 : vector<8x32xf32>
    %c120_92 = arith.constant 120 : index
    %c0_93 = arith.constant 0 : index
    %346 = vector.load %arg0[%c120_92, %c0_93] : memref<128x4xbf16, #tpu.memory_space<vmem>>, vector<8x4xbf16>
    %c0_94 = arith.constant 0 : index
    %c0_95 = arith.constant 0 : index
    %347 = vector.load %arg3[%c0_94, %c0_95] : memref<4x128xbf16, #tpu.memory_space<vmem>>, vector<4x128xbf16>
    %cst_96 = arith.constant dense<0.000000e+00> : vector<8x128xf32>
    %348 = tpu.matmul %346, %347, %cst_96 {dimension_numbers = #tpu.dot_dimension_numbers<[1], [0], [0], [1], [0, 0, 1, 1], [], []>} : vector<8x4xbf16>, vector<4x128xbf16>, vector<8x128xf32> -> vector<8x128xf32>
    %c0_97 = arith.constant 0 : index
    %c0_98 = arith.constant 0 : index
    %349 = vector.load %arg4[%c0_97, %c0_98] : memref<1x128xf32, #tpu.memory_space<vmem>>, vector<1x128xf32>
    %350 = vector.broadcast %349 : vector<1x128xf32> to vector<8x128xf32>
    %351 = arith.addf %348, %350 : vector<8x128xf32>
    %352 = arith.negf %351 : vector<8x128xf32>
    %353 = math.exp %352 : vector<8x128xf32>
    %cst_99 = arith.constant 1.000000e+00 : f32
    %354 = vector.broadcast %cst_99 : f32 to vector<8x128xf32>
    %355 = arith.addf %354, %353 : vector<8x128xf32>
    %356 = arith.divf %354, %355 : vector<8x128xf32>
    %357 = vector.extract_strided_slice %356 {offsets = [0, 0], sizes = [8, 32], strides = [1, 1]} : vector<8x128xf32> to vector<8x32xf32>
    %358 = vector.extract_strided_slice %356 {offsets = [0, 64], sizes = [8, 32], strides = [1, 1]} : vector<8x128xf32> to vector<8x32xf32>
    %cst_100 = arith.constant 2.000000e+00 : f32
    %359 = vector.broadcast %cst_100 : f32 to vector<8x32xf32>
    %360 = arith.mulf %359, %358 : vector<8x32xf32>
    %cst_101 = arith.constant 1.000000e+00 : f32
    %361 = vector.broadcast %cst_101 : f32 to vector<8x32xf32>
    %362 = arith.subf %360, %361 : vector<8x32xf32>
    %363 = arith.mulf %357, %362 : vector<8x32xf32>
    %364 = vector.extract_strided_slice %356 {offsets = [0, 96], sizes = [8, 32], strides = [1, 1]} : vector<8x128xf32> to vector<8x32xf32>
    %365 = math.tanh %363 : vector<8x32xf32>
    %366 = arith.mulf %364, %365 : vector<8x32xf32>
    %c0_102 = arith.constant 0 : index
    %c0_103 = arith.constant 0 : index
    %367 = vector.load %arg6[%c0_102, %c0_103] : memref<32x32xf32, #tpu.memory_space<vmem>>, vector<32x32xf32>
    %cst_104 = arith.constant dense<0.000000e+00> : vector<8x32xf32>
    %368 = tpu.matmul %345, %367, %cst_104 {dimension_numbers = #tpu.dot_dimension_numbers<[1], [0], [0], [1], [0, 0, 1, 1], [], []>} : vector<8x32xf32>, vector<32x32xf32>, vector<8x32xf32> -> vector<8x32xf32>
    %c0_105 = arith.constant 0 : index
    %c0_106 = arith.constant 0 : index
    %369 = vector.load %arg7[%c0_105, %c0_106] : memref<32x32xf32, #tpu.memory_space<vmem>>, vector<32x32xf32>
    %cst_107 = arith.constant dense<0.000000e+00> : vector<8x32xf32>
    %370 = tpu.matmul %366, %369, %cst_107 {dimension_numbers = #tpu.dot_dimension_numbers<[1], [0], [0], [1], [0, 0, 1, 1], [], []>} : vector<8x32xf32>, vector<32x32xf32>, vector<8x32xf32> -> vector<8x32xf32>
    %371 = arith.addf %368, %370 : vector<8x32xf32>
    %c0_108 = arith.constant 0 : index
    %c0_109 = arith.constant 0 : index
    %372 = vector.load %arg8[%c0_108, %c0_109] : memref<1x32xf32, #tpu.memory_space<vmem>>, vector<1x32xf32>
    %373 = vector.broadcast %372 : vector<1x32xf32> to vector<8x32xf32>
    %374 = arith.addf %371, %373 : vector<8x32xf32>
    %cst_110 = arith.constant 0.000000e+00 : f32
    %375 = vector.broadcast %cst_110 : f32 to vector<8x32xf32>
    %376 = arith.maximumf %374, %375 : vector<8x32xf32>
    %c0_111 = arith.constant 0 : index
    %c0_112 = arith.constant 0 : index
    %377 = vector.load %arg9[%c0_111, %c0_112] : memref<32x3xf32, #tpu.memory_space<vmem>>, vector<32x3xf32>
    %cst_113 = arith.constant dense<0.000000e+00> : vector<8x3xf32>
    %378 = tpu.matmul %376, %377, %cst_113 {dimension_numbers = #tpu.dot_dimension_numbers<[1], [0], [0], [1], [0, 0, 1, 1], [], []>} : vector<8x32xf32>, vector<32x3xf32>, vector<8x3xf32> -> vector<8x3xf32>
    %c0_114 = arith.constant 0 : index
    %c0_115 = arith.constant 0 : index
    %379 = vector.load %arg10[%c0_114, %c0_115] : memref<1x3xf32, #tpu.memory_space<vmem>>, vector<1x3xf32>
    %380 = vector.broadcast %379 : vector<1x3xf32> to vector<8x3xf32>
    %381 = arith.addf %378, %380 : vector<8x3xf32>
    %c0_116 = arith.constant 0 : index
    %c0_117 = arith.constant 0 : index
    %382 = vector.load %arg11[%c0_116, %c0_117] : memref<8x3xf32, #tpu.memory_space<vmem>>, vector<8x3xf32>
    tpu.vector_store %arg11[%c0_116, %c0_117], %381 {strides = array<i32>} : memref<8x3xf32, #tpu.memory_space<vmem>>, vector<8x3xf32>,
    return
  }
}

</mosaic_0001>

<bundles_post_ra>
// kernel: time_series_model_forward.1
= control target key start
LH: loop header
LB: loop body
LE: loop exit
PB: predicated region body
PF: predicated region fallthrough
CT: control target
= control target key end

     0   :  { %vm128_vm0 = vcmask 1041408   ;;  %v2855_v1 = vmov 0.0|0.0   ;;  %vm103_vm1 = vcmask 31744   ;;  %vm2856_vm2 = vmmov 0   ;;  %s2858_s12 = smov 64   ;;  %s2859_s13 = smov 32   ;;  %s3289_s1 = inlined_call_operand.vmem [shape: bf16[4,128], index: 1, kind: input, shape index: {}]   ;;  %s3290_s5 = inlined_call_operand.vmem [shape: f32[32,128], index: 5, kind: input, shape index: {}]   ;;  %s3291_s0 = inlined_call_operand.vmem [shape: bf16[128,4], index: 0, kind: input, shape index: {}]   ;;  %s3292_s2 = inlined_call_operand.vmem [shape: f32[1,128], index: 2, kind: input, shape index: {}]   ;;  %s3293_s3 = inlined_call_operand.vmem [shape: bf16[4,128], index: 3, kind: input, shape index: {}]   ;;  %s3294_s4 = inlined_call_operand.vmem [shape: f32[1,128], index: 4, kind: input, shape index: {}]   ;;  %s3295_s7 = inlined_call_operand.vmem [shape: f32[32,32], index: 7, kind: input, shape index: {}]   ;;  %s3296_s6 = inlined_call_operand.vmem [shape: f32[32,32], index: 6, kind: input, shape index: {}]   ;;  %s3297_s9 = inlined_call_operand.vmem [shape: f32[32,3], index: 9, kind: input, shape index: {}]   ;;  %s3298_s8 = inlined_call_operand.vmem [shape: f32[1,32], index: 8, kind: input, shape index: {}]   ;;  %s3299_s10 = inlined_call_operand.vmem [shape: f32[1,3], index: 10, kind: input, shape index: {}]   ;;  %s3300_s11 = inlined_call_operand.vmem [shape: f32[8,3], index: 11, kind: output, shape index: {}]  }
   0x1   :  { %v55_v0 = vld [vmem:[%s3289_s1] sm:$0x3]  ;;  %2623 = vmatprep.subr.bf16.mxu1 %v2855_v1  ;;  %v246_v3 = vld [vmem:[%s3290_s5 + $0x8] sm:$0xff]  ;;  %v2857_v7 = vmov 0.0   ;;  %v247_v9 = vld [vmem:[%s3290_s5 + $0x10] sm:$0xff]  ;;  %vm250_vm3 = vcmask 261120  }
   0x2   :  { %v245_v2 = vld [vmem:[%s3290_s5] sm:$0xff]  ;;  %2737 = vmatprep.subr.msk.bf16.mxu0 %vm128_vm0, %v55_v0  ;;  %v130_v4 = vsel %vm128_vm0, %v55_v0, 0  ;;  %2416 = vmatprep.mubr.msk.f32.mxu1 %vm2856_vm2, %v2857_v7  ;;  %v2745_v8 = vld [vmem:[%s3291_s0 + $0x8] sm:$0xff]   ;;  %v248_v10 = vld [vmem:[%s3290_s5 + $0x18] sm:$0xff]  ;;  %s2860_s15 = smov 96   ;;  %vm2205_vm4 = vcmask 23552  }
   0x3   :  { %v2933_v5 = vpack.c.bf16 %v246_v3, %v245_v2  ;;  %v2744_v6 = vld [vmem:[%s3291_s0] sm:$0xff]   ;;  %2391 = vmatpush3.bf16.msra.mxu0 %v130_v4  ;;  %v2952_v11 = vpack.c.bf16 %v248_v10, %v247_v9 }
   0x4   :  { %2392 = vmatprep.mubr.msk.bf16.mxu0 %vm103_vm1, %v2744_v6  ;;  %2647 = vmatprep.subr.bf16.mxu0 %v2855_v1  ;;  %v2972_v12 = vld [vmem:[%s3292_s2] ss:$0 sm:$0xff] }
   0x5   :  { %2625 = vmatpush3.bf16.msra.mxu1 %v2933_v5 }
   0x6   :  { %2626 = vmatprep.subr.bf16.mxu1 %v2855_v1  ;;  %2393 = vmatmul.mubr.msk.bf16.vlgmr.msra.gmra.mrb[0].mxu0 %vm103_vm1, %v2745_v8 }
   0x7   :  { %2649 = vmatpush3.bf16.msra.mxu0 %v2933_v5 }
   0x8   :  { %2650 = vmatprep.subr.bf16.mxu0 %v2855_v1 }
   0x9   :  { %2628 = vmatpush3.bf16.msra.mxu1 %v2952_v11 }
   0xa   :  { %2629 = vmatprep.subr.bf16.mxu1 %v2855_v1 }
   0xb   :  { %2652 = vmatpush3.bf16.msra.mxu0 %v2952_v11 }
   0xc   :  { %2417 = vmatmul.mubr.f32.vlgmr.msra.gmra.mrb[0].mxu1 %v2857_v7  ;;  %2659 = vmatprep.subr.bf16.mxu0 %v2855_v1 }
   0xd   :  { %2631 = vmatpush3.bf16.msra.mxu1 %v2933_v5  ;;  %2427 = vmatprep.mubr.msk.f32.mxu1 %vm2856_vm2, %v2857_v7 }
   0xe   :  { %2632 = vmatprep.subr.bf16.mxu1 %v2855_v1 }
  0x11   :  { %2634 = vmatpush3.bf16.msra.mxu1 %v2952_v11 }
  0x12   :  { %2635 = vmatprep.subr.bf16.mxu1 %v2855_v1 }
  0xd9   :  { %v2974_v13 = vpop.f32.mrb[0].mxu0 }
  0xda   :  { %v166_v14 = vpop.f32.mrb[1].mxu0  ;;  %v175_v55 = vadd.f32 %v2974_v13, %v2972_v12 }
  0xdb   :  { %v167_v15 = vadd.f32 %v2972_v12, %v166_v14  ;;  %v2977_v16 = vpop.f32.mrb[2].mxu0 }
  0xdc   :  { %v169_v17 = vpop.f32.mrb[3].mxu0 }
  0xdd   :  { %v170_v36 = vadd.f32 %v2972_v12, %v169_v17 }
  0xdf   :  { %v320_v18 = vpop.f32.mrb[0].mxu1 }
  0xe0   :  { %v324_v19 = vadd.f32 %v320_v18, %v167_v15  ;;  %v2418_v20 = vpop.f32.mrb[1].mxu1  ;;  %v178_v15 = vadd.f32 %v2977_v16, %v2972_v12 }
  0xe2   :  { %v2228_v21 = vmul.f32 -1.442695, %v324_v19 }
  0xe4   :  { %2752 = vpow2.f32 %v2228_v21 }
  0xee   :  { %v2753_v22 = vpop.eup %2752 }
  0xef   :  { %v328_v23 = vadd.f32 1.0, %v2753_v22 }
  0xf1   :  { %2754 = vrcp.f32 %v328_v23 }
  0xfb   :  { %v2755_v24 = vpop.eup %2754 }
  0xfc   :  { %v331_v25 = vmul.f32 2.0, %v2755_v24  ;;  %v333_v29 = vmul.f32 0.0, %v2755_v24 }
  0xfe   :  { %v2229_v26 = vadd.f32 -1.0, %v331_v25 }
 0x100   :  { %335 = vrot.lane.b32.xlu0 %v2229_v26, %s2858_s12 }
 0x172   :  { %v336_v27 = vpop.permute.xlu0 %335 }
 0x173   :  { %v338_v28 = vmul.f32 %v2755_v24, %v336_v27 }
 0x175   :  { %340 = vrot.lane.b32.xlu0 %v338_v28, %s2859_s13 }
 0x1e7   :  { %v341_v30 = vpop.permute.xlu0 %340 }
 0x1e8   :  { %v343_v31 = vadd.f32 %v341_v30, %v333_v29  ;;  %v2746_v30 = vld [vmem:[%s3291_s0 + $0x10] sm:$0xff]  }
 0x1e9   :  { %2396 = vmatprep.mubr.msk.bf16.mxu0 %vm103_vm1, %v2746_v30 }
 0x1ea   :  { %2756 = vtanh.f32 %v343_v31 }
 0x1f4   :  { %v2757_v32 = vpop.eup %2756 }
 0x1f5   :  { %346 = vrot.lane.b32.xlu1 %v2757_v32, %s2858_s12  ;;  %v2748_v32 = vld [vmem:[%s3291_s0 + $0x20] sm:$0xff]  }
 0x267   :  { %v347_v33 = vpop.permute.xlu1 %346 }
 0x268   :  { %v349_v34 = vmul.f32 %v2755_v24, %v347_v33  ;;  %v2749_v33 = vld [vmem:[%s3291_s0 + $0x28] sm:$0xff]  }
 0x26a   :  { %352 = vrot.lane.b32.xlu1 %v349_v34, %s2859_s13  ;;  %v2750_v34 = vld [vmem:[%s3291_s0 + $0x30] sm:$0xff]  }
 0x2dc   :  { %v353_v35 = vpop.permute.xlu1 %352 }
 0x2dd   :  { %2428 = vmatmul.mubr.msk.f32.vlgmr.msra.gmra.mrb[2].mxu1 %vm250_vm3, %v353_v35 }
 0x2de   :  { %2637 = vmatpush3.bf16.msra.mxu1 %v2933_v5  ;;  %2438 = vmatprep.mubr.msk.f32.mxu1 %vm2856_vm2, %v2857_v7 }
 0x2df   :  { %2638 = vmatprep.subr.bf16.mxu1 %v2855_v1 }
 0x2e2   :  { %2640 = vmatpush3.bf16.msra.mxu1 %v2952_v11 }
 0x2e3   :  { %2641 = vmatprep.subr.bf16.mxu1 %v2855_v1 }
 0x3b0   :  { %v422_v37 = vpop.f32.mrb[2].mxu1 }
 0x3b1   :  { %v426_v38 = vadd.f32 %v422_v37, %v170_v36  ;;  %v2429_v39 = vpop.f32.mrb[3].mxu1  ;;  %v2751_v36 = vld [vmem:[%s3291_s0 + $0x38] sm:$0xff]  }
 0x3b3   :  { %v2231_v40 = vmul.f32 -1.442695, %v426_v38 }
 0x3b5   :  { %2758 = vpow2.f32 %v2231_v40 }
 0x3bf   :  { %v2759_v41 = vpop.eup %2758 }
 0x3c0   :  { %v430_v42 = vadd.f32 1.0, %v2759_v41 }
 0x3c2   :  { %2760 = vrcp.f32 %v430_v42 }
 0x3cc   :  { %v2761_v43 = vpop.eup %2760 }
 0x3cd   :  { %v433_v44 = vmul.f32 2.0, %v2761_v43  ;;  %v435_v48 = vmul.f32 %v2761_v43, %v343_v31  ;;  %v2747_v31 = vld [vmem:[%s3291_s0 + $0x18] sm:$0xff]  }
 0x3ce   :  { %2397 = vmatmul.mubr.msk.bf16.gmra.mrb[4].mxu0 %vm103_vm1, %v2747_v31 }
 0x3cf   :  { %v2232_v45 = vadd.f32 -1.0, %v433_v44  ;;  %2400 = vmatprep.mubr.msk.bf16.mxu0 %vm103_vm1, %v2748_v32 }
 0x3d1   :  { %437 = vrot.lane.b32.xlu0 %v2232_v45, %s2858_s12 }
 0x3d6   :  { %2401 = vmatmul.mubr.msk.bf16.gmra.mrb[8].mxu0 %vm103_vm1, %v2749_v33 }
 0x3d7   :  { %2404 = vmatprep.mubr.msk.bf16.mxu0 %vm103_vm1, %v2750_v34 }
 0x3de   :  { %2405 = vmatmul.mubr.msk.bf16.gmra.mrb[12].mxu0 %vm103_vm1, %v2751_v36 }
 0x3df   :  { %2460 = vmatprep.mubr.msk.f32.mxu0 %vm2856_vm2, %v2857_v7 }
 0x443   :  { %v438_v46 = vpop.permute.xlu0 %437 }
 0x444   :  { %v440_v47 = vmul.f32 %v2761_v43, %v438_v46 }
 0x446   :  { %442 = vrot.lane.b32.xlu1 %v440_v47, %s2859_s13 }
 0x4a1   :  { %v3047_v39 = vpop.f32.mrb[4].mxu0 }
 0x4a2   :  { %v182_v40 = vpop.f32.mrb[5].mxu0  ;;  %v191_v31 = vadd.f32 %v3047_v39, %v2972_v12 }
 0x4a3   :  { %v3049_v41 = vpop.f32.mrb[6].mxu0 }
 0x4a4   :  { %v185_v42 = vpop.f32.mrb[7].mxu0 }
 0x4b8   :  { %v443_v49 = vpop.permute.xlu1 %442 }
 0x4b9   :  { %v445_v50 = vadd.f32 %v443_v49, %v435_v48 }
 0x4bb   :  { %2762 = vtanh.f32 %v445_v50 }
 0x4c5   :  { %v2763_v51 = vpop.eup %2762 }
 0x4c6   :  { %448 = vrot.lane.b32.xlu0 %v2763_v51, %s2858_s12 }
 0x538   :  { %v449_v52 = vpop.permute.xlu0 %448 }
 0x539   :  { %v451_v53 = vmul.f32 %v2761_v43, %v449_v52  ;;  %v3051_v43 = vpop.f32.mrb[8].mxu0  ;;  %v183_v52 = vadd.f32 %v2972_v12, %v182_v40 }
 0x53a   :  { %v3053_v44 = vpop.f32.mrb[9].mxu0 }
 0x53b   :  { %454 = vrot.lane.b32.xlu1 %v451_v53, %s2859_s13  ;;  %v3055_v45 = vpop.f32.mrb[10].mxu0 }
 0x53c   :  { %v3057_v46 = vpop.f32.mrb[11].mxu0 }
 0x53d   :  { %v3059_v47 = vpop.f32.mrb[12].mxu0 }
 0x53e   :  { %v3061_v48 = vpop.f32.mrb[13].mxu0 }
 0x53f   :  { %v3063_v49 = vpop.f32.mrb[14].mxu0 }
 0x5ad   :  { %v455_v54 = vpop.permute.xlu1 %454 }
 0x5ae   :  { %2439 = vmatmul.mubr.msk.f32.vlgmr.msra.gmra.mrb[4].mxu1 %vm250_vm3, %v455_v54 }
 0x5af   :  { %2643 = vmatpush3.bf16.msra.mxu1 %v2933_v5  ;;  %2449 = vmatprep.mubr.msk.f32.mxu1 %vm2856_vm2, %v2857_v7 }
 0x5b0   :  { %2644 = vmatprep.subr.bf16.mxu1 %v2855_v1 }
 0x5b3   :  { %2646 = vmatpush3.bf16.msra.mxu1 %v2952_v11 }
 0x5b4   :  { %2653 = vmatprep.subr.bf16.mxu1 %v2855_v1 }
 0x681   :  { %v524_v56 = vpop.f32.mrb[4].mxu1 }
 0x682   :  { %v528_v57 = vadd.f32 %v524_v56, %v175_v55  ;;  %v2440_v58 = vpop.f32.mrb[5].mxu1 }
 0x684   :  { %v2234_v59 = vmul.f32 -1.442695, %v528_v57 }
 0x686   :  { %2764 = vpow2.f32 %v2234_v59 }
 0x690   :  { %v2765_v60 = vpop.eup %2764 }
 0x691   :  { %v532_v61 = vadd.f32 1.0, %v2765_v60 }
 0x693   :  { %2766 = vrcp.f32 %v532_v61 }
 0x69d   :  { %v2767_v62 = vpop.eup %2766 }
 0x69e   :  { %v535_v63 = vmul.f32 2.0, %v2767_v62  ;;  %v537_v4 = vmul.f32 %v2767_v62, %v445_v50  ;;  %v3065_v50 = vpop.f32.mrb[15].mxu0 }
 0x6a0   :  { %v2235_v0 = vadd.f32 -1.0, %v535_v63 }
 0x6a2   :  { %539 = vrot.lane.b32.xlu0 %v2235_v0, %s2858_s12 }
 0x714   :  { %v540_v2 = vpop.permute.xlu0 %539 }
 0x715   :  { %v542_v3 = vmul.f32 %v2767_v62, %v540_v2 }
 0x717   :  { %544 = vrot.lane.b32.xlu1 %v542_v3, %s2859_s13 }
 0x789   :  { %v545_v6 = vpop.permute.xlu1 %544 }
 0x78a   :  { %v547_v8 = vadd.f32 %v545_v6, %v537_v4 }
 0x78c   :  { %2768 = vtanh.f32 %v547_v8 }
 0x796   :  { %v2769_v9 = vpop.eup %2768 }
 0x797   :  { %550 = vrot.lane.b32.xlu0 %v2769_v9, %s2858_s12 }
 0x809   :  { %v551_v10 = vpop.permute.xlu0 %550 }
 0x80a   :  { %v553_v13 = vmul.f32 %v2767_v62, %v551_v10  ;;  %v186_v10 = vadd.f32 %v2972_v12, %v185_v42 }
 0x80c   :  { %556 = vrot.lane.b32.xlu1 %v553_v13, %s2859_s13 }
 0x87e   :  { %v557_v14 = vpop.permute.xlu1 %556 }
 0x87f   :  { %2450 = vmatmul.mubr.msk.f32.vlgmr.msra.gmra.mrb[6].mxu1 %vm250_vm3, %v557_v14 }
 0x880   :  { %2655 = vmatpush3.bf16.msra.mxu1 %v2933_v5  ;;  %2471 = vmatprep.mubr.msk.f32.mxu1 %vm2856_vm2, %v2857_v7 }
 0x881   :  { %2656 = vmatprep.subr.bf16.mxu1 %v2855_v1 }
 0x884   :  { %2658 = vmatpush3.bf16.msra.mxu1 %v2952_v11 }
 0x885   :  { %2665 = vmatprep.subr.bf16.mxu1 %v2855_v1 }
 0x952   :  { %v626_v17 = vpop.f32.mrb[6].mxu1 }
 0x953   :  { %v630_v18 = vadd.f32 %v626_v17, %v178_v15  ;;  %v2451_v19 = vpop.f32.mrb[7].mxu1 }
 0x955   :  { %v2237_v20 = vmul.f32 -1.442695, %v630_v18 }
 0x957   :  { %2770 = vpow2.f32 %v2237_v20 }
 0x961   :  { %v2771_v21 = vpop.eup %2770 }
 0x962   :  { %v634_v22 = vadd.f32 1.0, %v2771_v21 }
 0x964   :  { %2772 = vrcp.f32 %v634_v22 }
 0x96e   :  { %v2773_v23 = vpop.eup %2772 }
 0x96f   :  { %v637_v24 = vmul.f32 2.0, %v2773_v23  ;;  %v639_v28 = vmul.f32 %v2773_v23, %v547_v8 }
 0x971   :  { %v2238_v25 = vadd.f32 -1.0, %v637_v24 }
 0x973   :  { %641 = vrot.lane.b32.xlu0 %v2238_v25, %s2858_s12 }
 0x9e5   :  { %v642_v26 = vpop.permute.xlu0 %641 }
 0x9e6   :  { %v644_v27 = vmul.f32 %v2773_v23, %v642_v26 }
 0x9e8   :  { %646 = vrot.lane.b32.xlu1 %v644_v27, %s2859_s13 }
 0xa5a   :  { %v647_v29 = vpop.permute.xlu1 %646 }
 0xa5b   :  { %v649_v16 = vadd.f32 %v647_v29, %v639_v28 }
 0xa5d   :  { %2774 = vtanh.f32 %v649_v16 }
 0xa67   :  { %v2775_v35 = vpop.eup %2774 }
 0xa68   :  { %652 = vrot.lane.b32.xlu0 %v2775_v35, %s2858_s12 }
 0xada   :  { %v653_v37 = vpop.permute.xlu0 %652 }
 0xadb   :  { %v655_v38 = vmul.f32 %v2773_v23, %v653_v37 }
 0xadd   :  { %658 = vrot.lane.b32.xlu1 %v655_v38, %s2859_s13 }
 0xb4f   :  { %v659_v51 = vpop.permute.xlu1 %658 }
 0xb50   :  { %2461 = vmatmul.mubr.msk.f32.vlgmr.msra.gmra.mrb[16].mxu0 %vm250_vm3, %v659_v51 }
 0xb51   :  { %2661 = vmatpush3.bf16.msra.mxu0 %v2933_v5  ;;  %2482 = vmatprep.mubr.msk.f32.mxu0 %vm2856_vm2, %v2857_v7 }
 0xb52   :  { %2662 = vmatprep.subr.bf16.mxu0 %v2855_v1 }
 0xb55   :  { %2664 = vmatpush3.bf16.msra.mxu0 %v2952_v11 }
 0xb56   :  { %2671 = vmatprep.subr.bf16.mxu0 %v2855_v1 }
 0xc23   :  { %v728_v53 = vpop.f32.mrb[16].mxu0 }
 0xc24   :  { %v732_v54 = vadd.f32 %v728_v53, %v183_v52  ;;  %v2462_v55 = vpop.f32.mrb[17].mxu0 }
 0xc26   :  { %v2240_v56 = vmul.f32 -1.442695, %v732_v54 }
 0xc28   :  { %2776 = vpow2.f32 %v2240_v56 }
 0xc32   :  { %v2777_v57 = vpop.eup %2776 }
 0xc33   :  { %v736_v58 = vadd.f32 1.0, %v2777_v57 }
 0xc35   :  { %2778 = vrcp.f32 %v736_v58 }
 0xc3f   :  { %v2779_v59 = vpop.eup %2778 }
 0xc40   :  { %v739_v60 = vmul.f32 2.0, %v2779_v59  ;;  %v741_v0 = vmul.f32 %v2779_v59, %v649_v16 }
 0xc42   :  { %v2241_v61 = vadd.f32 -1.0, %v739_v60 }
 0xc44   :  { %743 = vrot.lane.b32.xlu0 %v2241_v61, %s2858_s12 }
 0xcb6   :  { %v744_v62 = vpop.permute.xlu0 %743 }
 0xcb7   :  { %v746_v63 = vmul.f32 %v2779_v59, %v744_v62 }
 0xcb9   :  { %748 = vrot.lane.b32.xlu1 %v746_v63, %s2859_s13 }
 0xd2b   :  { %v749_v2 = vpop.permute.xlu1 %748 }
 0xd2c   :  { %v751_v3 = vadd.f32 %v749_v2, %v741_v0 }
 0xd2e   :  { %2780 = vtanh.f32 %v751_v3 }
 0xd38   :  { %v2781_v4 = vpop.eup %2780 }
 0xd39   :  { %754 = vrot.lane.b32.xlu0 %v2781_v4, %s2858_s12 }
 0xdab   :  { %v755_v6 = vpop.permute.xlu0 %754 }
 0xdac   :  { %v757_v8 = vmul.f32 %v2779_v59, %v755_v6  ;;  %v194_v59 = vadd.f32 %v3049_v41, %v2972_v12 }
 0xdae   :  { %760 = vrot.lane.b32.xlu1 %v757_v8, %s2859_s13 }
 0xe20   :  { %v761_v9 = vpop.permute.xlu1 %760 }
 0xe21   :  { %2472 = vmatmul.mubr.msk.f32.vlgmr.msra.gmra.mrb[8].mxu1 %vm250_vm3, %v761_v9 }
 0xe22   :  { %2667 = vmatpush3.bf16.msra.mxu1 %v2933_v5  ;;  %2493 = vmatprep.mubr.msk.f32.mxu1 %vm2856_vm2, %v2857_v7 }
 0xe23   :  { %2668 = vmatprep.subr.bf16.mxu1 %v2855_v1 }
 0xe26   :  { %2670 = vmatpush3.bf16.msra.mxu1 %v2952_v11 }
 0xe27   :  { %2677 = vmatprep.subr.bf16.mxu1 %v2855_v1 }
 0xef4   :  { %v830_v13 = vpop.f32.mrb[8].mxu1 }
 0xef5   :  { %v834_v14 = vadd.f32 %v830_v13, %v186_v10  ;;  %v2473_v15 = vpop.f32.mrb[9].mxu1 }
 0xef7   :  { %v2243_v17 = vmul.f32 -1.442695, %v834_v14 }
 0xef9   :  { %2782 = vpow2.f32 %v2243_v17 }
 0xf03   :  { %v2783_v18 = vpop.eup %2782 }
 0xf04   :  { %v838_v19 = vadd.f32 1.0, %v2783_v18 }
 0xf06   :  { %2784 = vrcp.f32 %v838_v19  ;;  %v199_v19 = vadd.f32 %v2972_v12, %v3053_v44 }
 0xf10   :  { %v2785_v20 = vpop.eup %2784 }
 0xf11   :  { %v841_v21 = vmul.f32 2.0, %v2785_v20  ;;  %v843_v25 = vmul.f32 %v2785_v20, %v751_v3 }
 0xf13   :  { %v2244_v22 = vadd.f32 -1.0, %v841_v21 }
 0xf15   :  { %845 = vrot.lane.b32.xlu0 %v2244_v22, %s2858_s12 }
 0xf87   :  { %v846_v23 = vpop.permute.xlu0 %845 }
 0xf88   :  { %v848_v24 = vmul.f32 %v2785_v20, %v846_v23 }
 0xf8a   :  { %850 = vrot.lane.b32.xlu1 %v848_v24, %s2859_s13 }
 0xffc   :  { %v851_v26 = vpop.permute.xlu1 %850 }
 0xffd   :  { %v853_v27 = vadd.f32 %v851_v26, %v843_v25 }
 0xfff   :  { %2786 = vtanh.f32 %v853_v27 }
0x1009   :  { %v2787_v28 = vpop.eup %2786 }
0x100a   :  { %856 = vrot.lane.b32.xlu0 %v2787_v28, %s2858_s12 }
0x107c   :  { %v857_v29 = vpop.permute.xlu0 %856 }
0x107d   :  { %v859_v16 = vmul.f32 %v2785_v20, %v857_v29 }
0x107f   :  { %862 = vrot.lane.b32.xlu1 %v859_v16, %s2859_s13 }
0x10f1   :  { %v863_v30 = vpop.permute.xlu1 %862 }
0x10f2   :  { %2483 = vmatmul.mubr.msk.f32.vlgmr.msra.gmra.mrb[18].mxu0 %vm250_vm3, %v863_v30 }
0x10f3   :  { %2673 = vmatpush3.bf16.msra.mxu0 %v2933_v5  ;;  %2504 = vmatprep.mubr.msk.f32.mxu0 %vm2856_vm2, %v2857_v7 }
0x10f4   :  { %2674 = vmatprep.subr.bf16.mxu0 %v2855_v1 }
0x10f7   :  { %2676 = vmatpush3.bf16.msra.mxu0 %v2952_v11 }
0x10f8   :  { %2683 = vmatprep.subr.bf16.mxu0 %v2855_v1 }
0x11c5   :  { %v932_v32 = vpop.f32.mrb[18].mxu0 }
0x11c6   :  { %v936_v33 = vadd.f32 %v932_v32, %v191_v31  ;;  %v2484_v34 = vpop.f32.mrb[19].mxu0 }
0x11c8   :  { %v2246_v35 = vmul.f32 -1.442695, %v936_v33 }
0x11ca   :  { %2788 = vpow2.f32 %v2246_v35 }
0x11d4   :  { %v2789_v36 = vpop.eup %2788 }
0x11d5   :  { %v940_v37 = vadd.f32 1.0, %v2789_v36  ;;  %v202_v36 = vadd.f32 %v2972_v12, %v3057_v46 }
0x11d7   :  { %2790 = vrcp.f32 %v940_v37 }
0x11e1   :  { %v2791_v38 = vpop.eup %2790 }
0x11e2   :  { %v943_v40 = vmul.f32 2.0, %v2791_v38  ;;  %v945_v53 = vmul.f32 %v2791_v38, %v853_v27 }
0x11e4   :  { %v2247_v42 = vadd.f32 -1.0, %v943_v40 }
0x11e6   :  { %947 = vrot.lane.b32.xlu0 %v2247_v42, %s2858_s12 }
0x1258   :  { %v948_v51 = vpop.permute.xlu0 %947 }
0x1259   :  { %v950_v52 = vmul.f32 %v2791_v38, %v948_v51 }
0x125b   :  { %952 = vrot.lane.b32.xlu1 %v950_v52, %s2859_s13 }
0x12cd   :  { %v953_v54 = vpop.permute.xlu1 %952 }
0x12ce   :  { %v955_v39 = vadd.f32 %v953_v54, %v945_v53 }
0x12d0   :  { %2792 = vtanh.f32 %v955_v39 }
0x12da   :  { %v2793_v55 = vpop.eup %2792 }
0x12db   :  { %958 = vrot.lane.b32.xlu0 %v2793_v55, %s2858_s12 }
0x134d   :  { %v959_v56 = vpop.permute.xlu0 %958 }
0x134e   :  { %v961_v57 = vmul.f32 %v2791_v38, %v959_v56 }
0x1350   :  { %964 = vrot.lane.b32.xlu1 %v961_v57, %s2859_s13 }
0x13c2   :  { %v965_v58 = vpop.permute.xlu1 %964 }
0x13c3   :  { %2494 = vmatmul.mubr.msk.f32.vlgmr.msra.gmra.mrb[10].mxu1 %vm250_vm3, %v965_v58 }
0x13c4   :  { %2679 = vmatpush3.bf16.msra.mxu1 %v2933_v5  ;;  %2515 = vmatprep.mubr.msk.f32.mxu1 %vm2856_vm2, %v2857_v7 }
0x13c5   :  { %2680 = vmatprep.subr.bf16.mxu1 %v2855_v1 }
0x13c8   :  { %2682 = vmatpush3.bf16.msra.mxu1 %v2952_v11 }
0x13c9   :  { %2689 = vmatprep.subr.bf16.mxu1 %v2855_v1 }
0x1496   :  { %v1034_v60 = vpop.f32.mrb[10].mxu1 }
0x1497   :  { %v1038_v61 = vadd.f32 %v1034_v60, %v194_v59  ;;  %v2495_v62 = vpop.f32.mrb[11].mxu1 }
0x1499   :  { %v2249_v63 = vmul.f32 -1.442695, %v1038_v61 }
0x149b   :  { %2794 = vpow2.f32 %v2249_v63  ;;  %v207_v63 = vadd.f32 %v3051_v43, %v2972_v12 }
0x14a5   :  { %v2795_v0 = vpop.eup %2794 }
0x14a6   :  { %v1042_v2 = vadd.f32 1.0, %v2795_v0 }
0x14a8   :  { %2796 = vrcp.f32 %v1042_v2 }
0x14b2   :  { %v2797_v3 = vpop.eup %2796 }
0x14b3   :  { %v1045_v4 = vmul.f32 2.0, %v2797_v3  ;;  %v1047_v10 = vmul.f32 %v2797_v3, %v955_v39 }
0x14b5   :  { %v2250_v6 = vadd.f32 -1.0, %v1045_v4 }
0x14b7   :  { %1049 = vrot.lane.b32.xlu0 %v2250_v6, %s2858_s12 }
0x1529   :  { %v1050_v8 = vpop.permute.xlu0 %1049 }
0x152a   :  { %v1052_v9 = vmul.f32 %v2797_v3, %v1050_v8 }
0x152c   :  { %1054 = vrot.lane.b32.xlu1 %v1052_v9, %s2859_s13 }
0x159e   :  { %v1055_v13 = vpop.permute.xlu1 %1054 }
0x159f   :  { %v1057_v41 = vadd.f32 %v1055_v13, %v1047_v10 }
0x15a1   :  { %2798 = vtanh.f32 %v1057_v41 }
0x15ab   :  { %v2799_v14 = vpop.eup %2798 }
0x15ac   :  { %1060 = vrot.lane.b32.xlu0 %v2799_v14, %s2858_s12 }
0x161e   :  { %v1061_v15 = vpop.permute.xlu0 %1060 }
0x161f   :  { %v1063_v17 = vmul.f32 %v2797_v3, %v1061_v15 }
0x1621   :  { %1066 = vrot.lane.b32.xlu1 %v1063_v17, %s2859_s13 }
0x1693   :  { %v1067_v18 = vpop.permute.xlu1 %1066 }
0x1694   :  { %2505 = vmatmul.mubr.msk.f32.vlgmr.msra.gmra.mrb[20].mxu0 %vm250_vm3, %v1067_v18 }
0x1695   :  { %2685 = vmatpush3.bf16.msra.mxu0 %v2933_v5  ;;  %2526 = vmatprep.mubr.msk.f32.mxu0 %vm2856_vm2, %v2857_v7 }
0x1696   :  { %2686 = vmatprep.subr.bf16.mxu0 %v2855_v1 }
0x1699   :  { %2688 = vmatpush3.bf16.msra.mxu0 %v2952_v11 }
0x169a   :  { %2695 = vmatprep.subr.bf16.mxu0 %v2855_v1 }
0x1767   :  { %v1136_v20 = vpop.f32.mrb[20].mxu0 }
0x1768   :  { %v1140_v21 = vadd.f32 %v1136_v20, %v199_v19  ;;  %v2506_v22 = vpop.f32.mrb[21].mxu0 }
0x1769   :  { %v210_v22 = vadd.f32 %v3055_v45, %v2972_v12 }
0x176a   :  { %v2252_v23 = vmul.f32 -1.442695, %v1140_v21 }
0x176c   :  { %2800 = vpow2.f32 %v2252_v23 }
0x1776   :  { %v2801_v24 = vpop.eup %2800 }
0x1777   :  { %v1144_v25 = vadd.f32 1.0, %v2801_v24 }
0x1779   :  { %2802 = vrcp.f32 %v1144_v25 }
0x1783   :  { %v2803_v26 = vpop.eup %2802 }
0x1784   :  { %v1147_v27 = vmul.f32 2.0, %v2803_v26  ;;  %v1149_v30 = vmul.f32 %v2803_v26, %v1057_v41 }
0x1786   :  { %v2253_v28 = vadd.f32 -1.0, %v1147_v27 }
0x1788   :  { %1151 = vrot.lane.b32.xlu0 %v2253_v28, %s2858_s12 }
0x17fa   :  { %v1152_v29 = vpop.permute.xlu0 %1151 }
0x17fb   :  { %v1154_v16 = vmul.f32 %v2803_v26, %v1152_v29 }
0x17fd   :  { %1156 = vrot.lane.b32.xlu1 %v1154_v16, %s2859_s13 }
0x186f   :  { %v1157_v31 = vpop.permute.xlu1 %1156 }
0x1870   :  { %v1159_v44 = vadd.f32 %v1157_v31, %v1149_v30 }
0x1872   :  { %2804 = vtanh.f32 %v1159_v44 }
0x187c   :  { %v2805_v32 = vpop.eup %2804 }
0x187d   :  { %1162 = vrot.lane.b32.xlu0 %v2805_v32, %s2858_s12 }
0x18ef   :  { %v1163_v33 = vpop.permute.xlu0 %1162 }
0x18f0   :  { %v1165_v34 = vmul.f32 %v2803_v26, %v1163_v33 }
0x18f2   :  { %1168 = vrot.lane.b32.xlu1 %v1165_v34, %s2859_s13 }
0x1964   :  { %v1169_v35 = vpop.permute.xlu1 %1168 }
0x1965   :  { %2516 = vmatmul.mubr.msk.f32.vlgmr.msra.gmra.mrb[12].mxu1 %vm250_vm3, %v1169_v35 }
0x1966   :  { %2691 = vmatpush3.bf16.msra.mxu1 %v2933_v5  ;;  %2537 = vmatprep.mubr.msk.f32.mxu1 %vm2856_vm2, %v2857_v7 }
0x1967   :  { %2692 = vmatprep.subr.bf16.mxu1 %v2855_v1 }
0x196a   :  { %2694 = vmatpush3.bf16.msra.mxu1 %v2952_v11 }
0x196b   :  { %2701 = vmatprep.subr.bf16.mxu1 %v2855_v1 }
0x1a38   :  { %v1238_v37 = vpop.f32.mrb[12].mxu1 }
0x1a39   :  { %v1242_v38 = vadd.f32 %v1238_v37, %v202_v36  ;;  %v2517_v40 = vpop.f32.mrb[13].mxu1 }
0x1a3b   :  { %v2255_v42 = vmul.f32 -1.442695, %v1242_v38  ;;  %v215_v38 = vadd.f32 %v2972_v12, %v3061_v48 }
0x1a3d   :  { %2806 = vpow2.f32 %v2255_v42 }
0x1a47   :  { %v2807_v51 = vpop.eup %2806 }
0x1a48   :  { %v1246_v52 = vadd.f32 1.0, %v2807_v51 }
0x1a4a   :  { %2808 = vrcp.f32 %v1246_v52 }
0x1a54   :  { %v2809_v53 = vpop.eup %2808 }
0x1a55   :  { %v1249_v54 = vmul.f32 2.0, %v2809_v53  ;;  %v1251_v57 = vmul.f32 %v2809_v53, %v1159_v44 }
0x1a57   :  { %v2256_v39 = vadd.f32 -1.0, %v1249_v54 }
0x1a59   :  { %1253 = vrot.lane.b32.xlu0 %v2256_v39, %s2858_s12 }
0x1acb   :  { %v1254_v55 = vpop.permute.xlu0 %1253 }
0x1acc   :  { %v1256_v56 = vmul.f32 %v2809_v53, %v1254_v55 }
0x1ace   :  { %1258 = vrot.lane.b32.xlu1 %v1256_v56, %s2859_s13 }
0x1b40   :  { %v1259_v58 = vpop.permute.xlu1 %1258 }
0x1b41   :  { %v1261_v46 = vadd.f32 %v1259_v58, %v1251_v57 }
0x1b43   :  { %2810 = vtanh.f32 %v1261_v46 }
0x1b4d   :  { %v2811_v59 = vpop.eup %2810 }
0x1b4e   :  { %1264 = vrot.lane.b32.xlu0 %v2811_v59, %s2858_s12 }
0x1bc0   :  { %v1265_v60 = vpop.permute.xlu0 %1264 }
0x1bc1   :  { %v1267_v61 = vmul.f32 %v2809_v53, %v1265_v60 }
0x1bc3   :  { %1270 = vrot.lane.b32.xlu1 %v1267_v61, %s2859_s13 }
0x1c35   :  { %v1271_v62 = vpop.permute.xlu1 %1270 }
0x1c36   :  { %2527 = vmatmul.mubr.msk.f32.vlgmr.msra.gmra.mrb[22].mxu0 %vm250_vm3, %v1271_v62 }
0x1c37   :  { %2697 = vmatpush3.bf16.msra.mxu0 %v2933_v5  ;;  %2548 = vmatprep.mubr.msk.f32.mxu0 %vm2856_vm2, %v2857_v7 }
0x1c38   :  { %2698 = vmatprep.subr.bf16.mxu0 %v2855_v1 }
0x1c3b   :  { %2700 = vmatpush3.bf16.msra.mxu0 %v2952_v11 }
0x1c3c   :  { %2707 = vmatprep.subr.bf16.mxu0 %v2855_v1 }
0x1d09   :  { %v1340_v0 = vpop.f32.mrb[22].mxu0 }
0x1d0a   :  { %v1344_v2 = vadd.f32 %v1340_v0, %v207_v63  ;;  %v2528_v3 = vpop.f32.mrb[23].mxu0  ;;  %v218_v0 = vadd.f32 %v2972_v12, %v3065_v50 }
0x1d0c   :  { %v2258_v4 = vmul.f32 -1.442695, %v1344_v2 }
0x1d0e   :  { %2812 = vpow2.f32 %v2258_v4 }
0x1d18   :  { %v2813_v6 = vpop.eup %2812 }
0x1d19   :  { %v1348_v8 = vadd.f32 1.0, %v2813_v6 }
0x1d1b   :  { %2814 = vrcp.f32 %v1348_v8 }
0x1d25   :  { %v2815_v9 = vpop.eup %2814 }
0x1d26   :  { %v1351_v10 = vmul.f32 2.0, %v2815_v9  ;;  %v1353_v15 = vmul.f32 %v2815_v9, %v1261_v46 }
0x1d28   :  { %v2259_v13 = vadd.f32 -1.0, %v1351_v10 }
0x1d2a   :  { %1355 = vrot.lane.b32.xlu0 %v2259_v13, %s2858_s12 }
0x1d9c   :  { %v1356_v41 = vpop.permute.xlu0 %1355 }
0x1d9d   :  { %v1358_v14 = vmul.f32 %v2815_v9, %v1356_v41 }
0x1d9f   :  { %1360 = vrot.lane.b32.xlu1 %v1358_v14, %s2859_s13 }
0x1e11   :  { %v1361_v17 = vpop.permute.xlu1 %1360 }
0x1e12   :  { %v1363_v43 = vadd.f32 %v1361_v17, %v1353_v15 }
0x1e14   :  { %2816 = vtanh.f32 %v1363_v43 }
0x1e1e   :  { %v2817_v18 = vpop.eup %2816 }
0x1e1f   :  { %1366 = vrot.lane.b32.xlu0 %v2817_v18, %s2858_s12 }
0x1e91   :  { %v1367_v19 = vpop.permute.xlu0 %1366 }
0x1e92   :  { %v1369_v20 = vmul.f32 %v2815_v9, %v1367_v19 }
0x1e94   :  { %1372 = vrot.lane.b32.xlu1 %v1369_v20, %s2859_s13  ;;  %v223_v20 = vadd.f32 %v3059_v47, %v2972_v12 }
0x1f06   :  { %v1373_v21 = vpop.permute.xlu1 %1372 }
0x1f07   :  { %2538 = vmatmul.mubr.msk.f32.vlgmr.msra.gmra.mrb[14].mxu1 %vm250_vm3, %v1373_v21 }
0x1f08   :  { %2703 = vmatpush3.bf16.msra.mxu1 %v2933_v5  ;;  %2559 = vmatprep.mubr.msk.f32.mxu1 %vm2856_vm2, %v2857_v7 }
0x1f09   :  { %2704 = vmatprep.subr.bf16.mxu1 %v2855_v1 }
0x1f0c   :  { %2706 = vmatpush3.bf16.msra.mxu1 %v2952_v11 }
0x1f0d   :  { %2713 = vmatprep.subr.bf16.mxu1 %v2855_v1 }
0x1fda   :  { %v1442_v23 = vpop.f32.mrb[14].mxu1 }
0x1fdb   :  { %v1446_v24 = vadd.f32 %v1442_v23, %v210_v22  ;;  %v2539_v25 = vpop.f32.mrb[15].mxu1 }
0x1fdd   :  { %v2261_v26 = vmul.f32 -1.442695, %v1446_v24 }
0x1fdf   :  { %2818 = vpow2.f32 %v2261_v26 }
0x1fe9   :  { %v2819_v27 = vpop.eup %2818 }
0x1fea   :  { %v1450_v28 = vadd.f32 1.0, %v2819_v27 }
0x1fec   :  { %2820 = vrcp.f32 %v1450_v28 }
0x1ff6   :  { %v2821_v29 = vpop.eup %2820 }
0x1ff7   :  { %v1453_v16 = vmul.f32 2.0, %v2821_v29  ;;  %v1455_v32 = vmul.f32 %v2821_v29, %v1363_v43 }
0x1ff9   :  { %v2262_v30 = vadd.f32 -1.0, %v1453_v16 }
0x1ffb   :  { %1457 = vrot.lane.b32.xlu0 %v2262_v30, %s2858_s12 }
0x206d   :  { %v1458_v31 = vpop.permute.xlu0 %1457 }
0x206e   :  { %v1460_v44 = vmul.f32 %v2821_v29, %v1458_v31 }
0x2070   :  { %1462 = vrot.lane.b32.xlu1 %v1460_v44, %s2859_s13 }
0x20e2   :  { %v1463_v33 = vpop.permute.xlu1 %1462 }
0x20e3   :  { %v1465_v45 = vadd.f32 %v1463_v33, %v1455_v32 }
0x20e5   :  { %2822 = vtanh.f32 %v1465_v45 }
0x20ef   :  { %v2823_v34 = vpop.eup %2822 }
0x20f0   :  { %1468 = vrot.lane.b32.xlu0 %v2823_v34, %s2858_s12 }
0x2162   :  { %v1469_v35 = vpop.permute.xlu0 %1468 }
0x2163   :  { %v1471_v36 = vmul.f32 %v2821_v29, %v1469_v35 }
0x2165   :  { %1474 = vrot.lane.b32.xlu1 %v1471_v36, %s2859_s13  ;;  %v1880_v36 = vld [vmem:[%s3291_s0 + $0x3c] sm:$0xf] }
0x21d7   :  { %v1475_v37 = vpop.permute.xlu1 %1474 }
0x21d8   :  { %2549 = vmatmul.mubr.msk.f32.vlgmr.msra.gmra.mrb[24].mxu0 %vm250_vm3, %v1475_v37  ;;  %v2854_v37 = vld [vmem:[%s3292_s2] ss:$0 sm:$0xff] }
0x21d9   :  { %2709 = vmatpush3.bf16.msra.mxu0 %v2933_v5  ;;  %2570 = vmatprep.mubr.msk.f32.mxu0 %vm2856_vm2, %v2857_v7 }
0x21da   :  { %2710 = vmatprep.subr.bf16.mxu0 %v2855_v1 }
0x21dd   :  { %2712 = vmatpush3.bf16.msra.mxu0 %v2952_v11 }
0x21de   :  { %2719 = vmatprep.subr.bf16.mxu0 %v2855_v1 }
0x22ab   :  { %v1544_v40 = vpop.f32.mrb[24].mxu0 }
0x22ac   :  { %v1548_v42 = vadd.f32 %v1544_v40, %v215_v38  ;;  %v2550_v51 = vpop.f32.mrb[25].mxu0  ;;  %v226_v38 = vadd.f32 %v2854_v37, %v3063_v49  ;;  %v2282_v37 = vld [vmem:[%s3299_s10] ss:$0 sm:$0xff] }
0x22ae   :  { %v2264_v52 = vmul.f32 -1.442695, %v1548_v42 }
0x22b0   :  { %2824 = vpow2.f32 %v2264_v52  ;;  %v2275_v52 = vld [vmem:[%s3294_s4] ss:$0 sm:$0xff] }
0x22ba   :  { %v2825_v53 = vpop.eup %2824 }
0x22bb   :  { %v1552_v54 = vadd.f32 1.0, %v2825_v53 }
0x22bd   :  { %2826 = vrcp.f32 %v1552_v54 }
0x22c7   :  { %v2827_v39 = vpop.eup %2826 }
0x22c8   :  { %v1555_v55 = vmul.f32 2.0, %v2827_v39  ;;  %v1557_v46 = vmul.f32 %v2827_v39, %v1465_v45  ;;  %v1881_v45 = vld [vmem:[%s3293_s3] sm:$0x3] }
0x22c9   :  { %v1893_v34 = vsel %vm128_vm0, %v1881_v45, 0  ;;  %v2281_v45 = vld [vmem:[%s3298_s8] ss:$0 sm:$0xff] }
0x22ca   :  { %v2265_v56 = vadd.f32 -1.0, %v1555_v55 }
0x22cc   :  { %1559 = vrot.lane.b32.xlu0 %v2265_v56, %s2858_s12 }
0x233e   :  { %v1560_v57 = vpop.permute.xlu0 %1559 }
0x233f   :  { %v1562_v58 = vmul.f32 %v2827_v39, %v1560_v57 }
0x2341   :  { %1564 = vrot.lane.b32.xlu1 %v1562_v58, %s2859_s13 }
0x23b3   :  { %v1565_v59 = vpop.permute.xlu1 %1564 }
0x23b4   :  { %v1567_v48 = vadd.f32 %v1565_v59, %v1557_v46 }
0x23b6   :  { %2828 = vtanh.f32 %v1567_v48 }
0x23c0   :  { %v2829_v60 = vpop.eup %2828 }
0x23c1   :  { %1570 = vrot.lane.b32.xlu0 %v2829_v60, %s2858_s12 }
0x2433   :  { %v1571_v61 = vpop.permute.xlu0 %1570 }
0x2434   :  { %v1573_v62 = vmul.f32 %v2827_v39, %v1571_v61 }
0x2436   :  { %1576 = vrot.lane.b32.xlu1 %v1573_v62, %s2859_s13 }
0x24a8   :  { %v1577_v63 = vpop.permute.xlu1 %1576 }
0x24a9   :  { %2560 = vmatmul.mubr.msk.f32.vlgmr.msra.gmra.mrb[16].mxu1 %vm250_vm3, %v1577_v63 }
0x24aa   :  { %2715 = vmatpush3.bf16.msra.mxu1 %v2933_v5  ;;  %2581 = vmatprep.mubr.msk.f32.mxu1 %vm2856_vm2, %v2857_v7 }
0x24ab   :  { %2716 = vmatprep.subr.bf16.mxu1 %v2855_v1 }
0x24ae   :  { %2718 = vmatpush3.bf16.msra.mxu1 %v2952_v11 }
0x24af   :  { %2584 = vmatprep.subr.bf16.mxu1 %v2857_v7 }
0x257c   :  { %v1646_v2 = vpop.f32.mrb[16].mxu1 }
0x257d   :  { %v1650_v3 = vadd.f32 %v1646_v2, %v218_v0  ;;  %v2561_v4 = vpop.f32.mrb[17].mxu1 }
0x257f   :  { %v2267_v6 = vmul.f32 -1.442695, %v1650_v3 }
0x2581   :  { %2830 = vpow2.f32 %v2267_v6 }
0x258b   :  { %v2831_v8 = vpop.eup %2830 }
0x258c   :  { %v1654_v9 = vadd.f32 1.0, %v2831_v8 }
0x258e   :  { %2832 = vrcp.f32 %v1654_v9  ;;  %v1958_v9 = vld [vmem:[%s3295_s7] sm:$0xff] }
0x2598   :  { %v2833_v5 = vpop.eup %2832 }
0x2599   :  { %v1657_v10 = vmul.f32 2.0, %v2833_v5  ;;  %v1659_v14 = vmul.f32 %v2833_v5, %v1567_v48 }
0x259b   :  { %v2268_v13 = vadd.f32 -1.0, %v1657_v10 }
0x259d   :  { %1661 = vrot.lane.b32.xlu0 %v2268_v13, %s2858_s12 }
0x260f   :  { %v1662_v41 = vpop.permute.xlu0 %1661 }
0x2610   :  { %v1664_v11 = vmul.f32 %v2833_v5, %v1662_v41 }
0x2612   :  { %1666 = vrot.lane.b32.xlu1 %v1664_v11, %s2859_s13  ;;  %v1960_v11 = vld [vmem:[%s3295_s7 + $0x10] sm:$0xff] }
0x2684   :  { %v1667_v15 = vpop.permute.xlu1 %1666 }
0x2685   :  { %v1669_v50 = vadd.f32 %v1667_v15, %v1659_v14  ;;  %v1961_v14 = vld [vmem:[%s3295_s7 + $0x18] sm:$0xff] }
0x2687   :  { %2834 = vtanh.f32 %v1669_v50 }
0x2691   :  { %v2835_v17 = vpop.eup %2834 }
0x2692   :  { %1672 = vrot.lane.b32.xlu0 %v2835_v17, %s2858_s12 }
0x2704   :  { %v1673_v43 = vpop.permute.xlu0 %1672 }
0x2705   :  { %v1675_v18 = vmul.f32 %v2833_v5, %v1673_v43  ;;  %v1959_v5 = vld [vmem:[%s3295_s7 + $0x8] sm:$0xff]  ;;  %v1954_v43 = vld [vmem:[%s3296_s6] sm:$0xff] }
0x2706   :  { %v2720_v10 = vpack.c.bf16 %v1959_v5, %v1958_v9 }
0x2707   :  { %1678 = vrot.lane.b32.xlu1 %v1675_v18, %s2859_s13  ;;  %v1955_v18 = vld [vmem:[%s3296_s6 + $0x8] sm:$0xff] }
0x2779   :  { %v1679_v19 = vpop.permute.xlu1 %1678 }
0x277a   :  { %2571 = vmatmul.mubr.msk.f32.vlgmr.msra.gmra.mrb[26].mxu0 %vm250_vm3, %v1679_v19  ;;  %v1956_v19 = vld [vmem:[%s3296_s6 + $0x10] sm:$0xff] }
0x277b   :  { %2598 = vmatprep.mubr.msk.f32.mxu0 %vm2856_vm2, %v2857_v7  ;;  %2721 = vmatpush3.bf16.msra.mxu0 %v2720_v10 }
0x277c   :  { %2722 = vmatprep.subr.bf16.mxu0 %v2855_v1 }
0x284d   :  { %v1748_v21 = vpop.f32.mrb[26].mxu0 }
0x284e   :  { %v1752_v22 = vadd.f32 %v1748_v21, %v223_v20  ;;  %v2572_v23 = vpop.f32.mrb[27].mxu0  ;;  %v2726_v20 = vpack.c.bf16 %v1955_v18, %v1954_v43  ;;  %v1957_v21 = vld [vmem:[%s3296_s6 + $0x18] sm:$0xff] }
0x2850   :  { %v2270_v24 = vmul.f32 -1.442695, %v1752_v22  ;;  %v2729_v22 = vpack.c.bf16 %v1957_v21, %v1956_v19 }
0x2852   :  { %2836 = vpow2.f32 %v2270_v24 }
0x285c   :  { %v2837_v25 = vpop.eup %2836 }
0x285d   :  { %v1756_v26 = vadd.f32 1.0, %v2837_v25 }
0x285f   :  { %2838 = vrcp.f32 %v1756_v26 }
0x2869   :  { %v2839_v27 = vpop.eup %2838 }
0x286a   :  { %v1759_v28 = vmul.f32 2.0, %v2839_v27  ;;  %v1761_v31 = vmul.f32 %v2839_v27, %v1669_v50  ;;  %v2723_v50 = vpack.c.bf16 %v1961_v14, %v1960_v11 }
0x286c   :  { %v2271_v29 = vadd.f32 -1.0, %v1759_v28  ;;  %2724 = vmatpush3.bf16.msra.mxu0 %v2723_v50 }
0x286d   :  { %2731 = vmatprep.subr.bf16.mxu0 %v2855_v1 }
0x286e   :  { %1763 = vrot.lane.b32.xlu0 %v2271_v29, %s2858_s12 }
0x28e0   :  { %v1764_v16 = vpop.permute.xlu0 %1763 }
0x28e1   :  { %v1766_v30 = vmul.f32 %v2839_v27, %v1764_v16  ;;  %v2121_v16 = vld [vmem:[%s3297_s9] sm:$0xff] }
0x28e3   :  { %1768 = vrot.lane.b32.xlu1 %v1766_v30, %s2859_s13  ;;  %v2122_v30 = vld [vmem:[%s3297_s9 + $0x8] sm:$0xff] }
0x2955   :  { %v1769_v44 = vpop.permute.xlu1 %1768 }
0x2956   :  { %v3202_v12 = vadd.f32 %v1769_v44, %v1761_v31  ;;  %v2732_v31 = vpack.c.bf16 %v2122_v30, %v2121_v16  ;;  %v2123_v44 = vld [vmem:[%s3297_s9 + $0x10] sm:$0xff] }
0x2958   :  { %2840 = vtanh.f32 %v3202_v12 }
0x2962   :  { %v2841_v47 = vpop.eup %2840 }
0x2963   :  { %1774 = vrot.lane.b32.xlu0 %v2841_v47, %s2858_s12 }
0x29d5   :  { %v1775_v32 = vpop.permute.xlu0 %1774 }
0x29d6   :  { %v1777_v33 = vmul.f32 %v2839_v27, %v1775_v32 }
0x29d8   :  { %1780 = vrot.lane.b32.xlu1 %v1777_v33, %s2859_s13 }
0x2a4a   :  { %v1781_v35 = vpop.permute.xlu1 %1780 }
0x2a4b   :  { %2582 = vmatmul.mubr.msk.f32.vlgmr.msra.gmra.mrb[18].mxu1 %vm250_vm3, %v1781_v35 }
0x2a4c   :  { %2585 = vmatpush3.bf16.msra.mxu1 %v1893_v34  ;;  %2586 = vmatprep.mubr.msk.bf16.mxu1 %vm2856_vm2, %v2857_v7 }
0x2a4d   :  { %2725 = vmatprep.subr.bf16.mxu1 %v2855_v1 }
0x2a4f   :  { %2587 = vmatmul.mubr.msk.bf16.vlgmr.msra.gmra.mrb[20].mxu1 %vm103_vm1, %v1880_v36 }
0x2a50   :  { %2609 = vmatprep.mubr.msk.f32.mxu1 %vm2856_vm2, %v2857_v7  ;;  %2727 = vmatpush3.bf16.msra.mxu1 %v2726_v20 }
0x2a51   :  { %2728 = vmatprep.subr.bf16.mxu1 %v2855_v1 }
0x2a54   :  { %2730 = vmatpush3.bf16.msra.mxu1 %v2729_v22 }
0x2b1e   :  { %v1850_v40 = vpop.f32.mrb[18].mxu1 }
0x2b1f   :  { %v1854_v42 = vadd.f32 %v1850_v40, %v226_v38  ;;  %v2583_v51 = vpop.f32.mrb[19].mxu1 }
0x2b21   :  { %v2273_v53 = vmul.f32 -1.442695, %v1854_v42 }
0x2b22   :  { %v1929_v54 = vpop.f32.mrb[20].mxu1 }
0x2b23   :  { %2842 = vpow2.f32 %v2273_v53  ;;  %v1930_v39 = vadd.f32 %v2275_v52, %v1929_v54  ;;  %v2588_v55 = vpop.f32.mrb[21].mxu1 }
0x2b24   :  { %v1932_v56 = vpop.f32.mrb[22].mxu1 }
0x2b25   :  { %v2277_v57 = vmul.f32 -1.442695, %v1930_v39  ;;  %v2589_v58 = vpop.f32.mrb[23].mxu1 }
0x2b27   :  { %2844 = vpow2.f32 %v2277_v57 }
0x2b2d   :  { %v2843_v46 = vpop.eup %2842 }
0x2b2e   :  { %v1858_v59 = vadd.f32 1.0, %v2843_v46 }
0x2b30   :  { %2846 = vrcp.f32 %v1858_v59 }
0x2b31   :  { %v2845_v49 = vpop.eup %2844 }
0x2b32   :  { %v1938_v48 = vadd.f32 1.0, %v2845_v49 }
0x2b34   :  { %2848 = vrcp.f32 %v1938_v48 }
0x2b3a   :  { %v2847_v60 = vpop.eup %2846 }
0x2b3b   :  { %v1861_v61 = vmul.f32 2.0, %v2847_v60  ;;  %v1863_v41 = vmul.f32 %v2847_v60, %v3202_v12 }
0x2b3d   :  { %v2274_v62 = vadd.f32 -1.0, %v1861_v61 }
0x2b3e   :  { %v2849_v63 = vpop.eup %2848 }
0x2b3f   :  { %1865 = vrot.lane.b32.xlu0 %v2274_v62, %s2858_s12  ;;  %v1941_v0 = vmul.f32 2.0, %v2849_v63 }
0x2b41   :  { %v2278_v2 = vadd.f32 -1.0, %v1941_v0 }
0x2b43   :  { %1944 = vrot.lane.b32.xlu0 %v2278_v2, %s2858_s12 }
0x2bb1   :  { %v1866_v3 = vpop.permute.xlu0 %1865 }
0x2bb2   :  { %v1868_v4 = vmul.f32 %v2847_v60, %v1866_v3 }
0x2bb4   :  { %1870 = vrot.lane.b32.xlu1 %v1868_v4, %s2859_s13 }
0x2bb5   :  { %v1945_v6 = vpop.permute.xlu0 %1944 }
0x2bb6   :  { %v1947_v8 = vmul.f32 %v2849_v63, %v1945_v6 }
0x2bb8   :  { %2850 = vtanh.f32 %v1947_v8 }
0x2bc2   :  { %v2851_v13 = vpop.eup %2850 }
0x2bc3   :  { %1950 = vrot.lane.b32.xlu0 %v2851_v13, %s2860_s15 }
0x2c26   :  { %v1871_v15 = vpop.permute.xlu1 %1870 }
0x2c27   :  { %v1873_v17 = vadd.f32 %v1871_v15, %v1863_v41 }
0x2c29   :  { %2852 = vtanh.f32 %v1873_v17 }
0x2c33   :  { %v2853_v23 = vpop.eup %2852 }
0x2c34   :  { %1876 = vrot.lane.b32.xlu1 %v2853_v23, %s2858_s12 }
0x2c35   :  { %v1951_v24 = vpop.permute.xlu0 %1950 }
0x2c36   :  { %v1953_v25 = vmul.f32 %v2849_v63, %v1951_v24 }
0x2c38   :  { %1963 = vrot.lane.b32.xlu1 %v1953_v25, %s2859_s13 }
0x2ca6   :  { %v1877_v26 = vpop.permute.xlu1 %1876 }
0x2ca7   :  { %v1879_v27 = vmul.f32 %v2847_v60, %v1877_v26 }
0x2ca9   :  { %2038 = vrot.lane.b32.xlu0 %v1879_v27, %s2859_s13 }
0x2caa   :  { %v1964_v28 = vpop.permute.xlu1 %1963 }
0x2cab   :  { %2599 = vmatmul.mubr.msk.f32.vlgmr.msra.gmra.mrb[28].mxu0 %vm250_vm3, %v1964_v28 }
0x2cac   :  { %2620 = vmatprep.mubr.msk.f32.mxu0 %vm2856_vm2, %v2857_v7  ;;  %2733 = vmatpush3.bf16.msra.mxu0 %v2732_v31  ;;  %v2124_v7 = vld [vmem:[%s3297_s9 + $0x18] sm:$0xff] }
0x2cad   :  { %2734 = vmatprep.subr.bf16.mxu0 %v2855_v1  ;;  %v2735_v12 = vpack.c.bf16 %v2124_v7, %v2123_v44 }
0x2cb0   :  { %2736 = vmatpush3.bf16.msra.mxu0 %v2735_v12 }
0x2d1b   :  { %v2039_v29 = vpop.permute.xlu0 %2038 }
0x2d1c   :  { %2610 = vmatmul.mubr.msk.f32.vlgmr.msra.gmra.mrb[24].mxu1 %vm250_vm3, %v2039_v29 }
0x2d7e   :  { %v2033_v47 = vpop.f32.mrb[28].mxu0 }
0x2d7f   :  { %v2600_v32 = vpop.f32.mrb[29].mxu0 }
0x2def   :  { %v2108_v33 = vpop.f32.mrb[24].mxu1 }
0x2df0   :  { %v2109_v34 = vadd.f32 %v2108_v33, %v2033_v47  ;;  %v2611_v35 = vpop.f32.mrb[25].mxu1 }
0x2df2   :  { %v2119_v1 = vadd.f32 %v2281_v45, %v2109_v34 }
0x2df4   :  { %v2120_v36 = vmax.f32 %v2119_v1, 0.0 }
0x2df6   :  { %2621 = vmatmul.mubr.msk.f32.vlgmr.msra.gmra.mrb[30].mxu0 %vm250_vm3, %v2120_v36 }
0x2ec9   :  { %v2201_v38 = vpop.f32.mrb[30].mxu0 }
0x2eca   :  { %v2202_v40 = vadd.f32 %v2282_v37, %v2201_v38  ;;  %v2622_v42 = vpop.f32.mrb[31].mxu0 }
0x2ecc   :  { %2206 = vst.msk [vmem:[%s3300_s11] sm:$0xff] %vm2205_vm4, %v2202_v40 }

</bundles_post_ra>
